<compile_context>
chip_gen: v7x
topology: tpu7x:2x2x1
jax: 0.10.0
libtpu: 0.0.40
codegen_flags: <defaults>
</compile_context>

<pallas_src>
import functools

import jax
import jax.numpy as jnp
from jax.experimental import pallas as pl
from jax.experimental.pallas import tpu as pltpu

LANE = 128
SUBLANE = 8

D_IN = 784    # 28*28 MNIST pixels
D_H = 400     # encoder / decoder width


def _round_up(n, m):
    return ((n + m - 1) // m) * m


D_IN_P = _round_up(D_IN, LANE)   # 896
D_H_P = _round_up(D_H, LANE)     # 512


def _autoencoder_kernel(x_ref, w1_ref, w2_ref, w3_ref, w4_ref, out_ref, lat_ref):
    """Fused forward for one batch tile: 4 MXU matmuls (bf16 in, f32 acc) + ReLUs."""
    cdt = w1_ref.dtype  # compute dtype (bf16)
    x = x_ref[...]
    h1 = jnp.maximum(
        jnp.dot(x, w1_ref[...], preferred_element_type=jnp.float32), 0.0)
    h2 = jnp.maximum(
        jnp.dot(h1.astype(cdt), w2_ref[...], preferred_element_type=jnp.float32), 0.0)
    lat_ref[...] = h2.astype(lat_ref.dtype)          # self.latent = x
    h3 = jnp.maximum(
        jnp.dot(h2.astype(cdt), w3_ref[...], preferred_element_type=jnp.float32), 0.0)
    h4 = jnp.maximum(
        jnp.dot(h3.astype(cdt), w4_ref[...], preferred_element_type=jnp.float32), 0.0)
    out_ref[...] = h4.astype(out_ref.dtype)


def prepare_params(w1, w2, w3, w4, compute_dtype=jnp.bfloat16):
    """One-time weight prep (call OUTSIDE the per-step forward).

    Takes PyTorch nn.Linear weights with layout (out, in), transposes to
    (in, out), zero-pads every dim to a 128 multiple and casts to the MXU
    compute dtype. Zero padding keeps the math exact after slicing.
    """
    def prep(w):
        out_f, in_f = w.shape
        wp = jnp.zeros((_round_up(in_f, LANE), _round_up(out_f, LANE)), compute_dtype)
        return wp.at[:in_f, :out_f].set(w.T.astype(compute_dtype))
    return prep(w1), prep(w2), prep(w3), prep(w4)


@functools.partial(jax.jit, static_argnames=("hidden", "block_b"))
def simple_mnist_autoencoder(x, w1p, w2p, w3p, w4p, *, hidden, block_b=512):
    """
    x   : (B, 784) float32
    w*p : padded/transposed bf16 weights from prepare_params()
    Returns (reconstruction (B, 784) f32, latent (B, hidden) f32).
    """
    B, d_in = x.shape
    assert d_in == D_IN
    hid_p = w2p.shape[1]          # padded hidden (multiple of 128)
    cdt = w1p.dtype

    # Batch tile: large (amortizes ~0.35us/grid-step overhead, enables DMA
    # pipelining of x/out) but never bigger than the 8-aligned batch.
    tb = min(block_b, _round_up(B, SUBLANE))
    b_pad = _round_up(B, tb)

    # Pad batch + feature dim of the input, cast to compute dtype.
    xp = jnp.zeros((b_pad, D_IN_P), cdt).at[:B, :d_in].set(x.astype(cdt))

    grid = (b_pad // tb,)

    # Weights: full-array blocks with a constant index_map -> resident in VMEM,
    # DMA'd only once across all batch tiles.
    def w_spec(shape):
        return pl.BlockSpec(shape, lambda i: (0, 0))

    flops = 2 * b_pad * (D_IN_P * D_H_P + D_H_P * hid_p + hid_p * D_H_P + D_H_P * D_IN_P)
    bytes_accessed = (
        xp.size * xp.dtype.itemsize
        + sum(w.size * w.dtype.itemsize for w in (w1p, w2p, w3p, w4p))
        + b_pad * D_IN_P * 4          # f32 reconstruction out
        + b_pad * hid_p * 4           # f32 latent out
    )

    out_p, lat_p = pl.pallas_call(
        _autoencoder_kernel,
        out_shape=(
            jax.ShapeDtypeStruct((b_pad, D_IN_P), jnp.float32),
            jax.ShapeDtypeStruct((b_pad, hid_p), jnp.float32),
        ),
        grid=grid,
        in_specs=[
            pl.BlockSpec((tb, D_IN_P), lambda i: (i, 0)),   # x tile (pipelined)
            w_spec((D_IN_P, D_H_P)),                        # W1 (896, 512)
            w_spec((D_H_P, hid_p)),                         # W2 (512, 128)
            w_spec((hid_p, D_H_P)),                         # W3 (128, 512)
            w_spec((D_H_P, D_IN_P)),                        # W4 (512, 896)
        ],
        out_specs=(
            pl.BlockSpec((tb, D_IN_P), lambda i: (i, 0)),   # reconstruction tile
            pl.BlockSpec((tb, hid_p), lambda i: (i, 0)),    # latent tile (lane-dense)
        ),
        compiler_params=pltpu.CompilerParams(
            dimension_semantics=("parallel",),              # 2 TCs on v7x
            vmem_limit_bytes=32 * 1024 * 1024,              # fits v5e/v6e/v7x
        ),
        cost_estimate=pl.CostEstimate(
            flops=flops, transcendentals=0, bytes_accessed=bytes_accessed),
    )(xp, w1p, w2p, w3p, w4p)

    # Slice padding back off (zero-padded rows/cols contribute nothing).
    return out_p[:B, :D_IN], lat_p[:B, :hidden]


def _init_params(key, hidden):
    """Deterministic Kaiming-uniform-ish init matching nn.Linear weight shapes."""
    k1, k2, k3, k4 = jax.random.split(key, 4)

    def init(k, out_f, in_f):
        bound = 1.0 / jnp.sqrt(in_f)
        return jax.random.uniform(k, (out_f, in_f), jnp.float32, -bound, bound)

    w1 = init(k1, D_H, D_IN)
    w2 = init(k2, hidden, D_H)
    w3 = init(k3, D_H, hidden)
    w4 = init(k4, D_IN, D_H)
    return w1, w2, w3, w4


def _reference(x, w1, w2, w3, w4):
    """Pure f32 reference matching the PyTorch module."""
    h1 = jax.nn.relu(x @ w1.T)
    h2 = jax.nn.relu(h1 @ w2.T)
    h3 = jax.nn.relu(h2 @ w3.T)
    h4 = jax.nn.relu(h3 @ w4.T)
    return h4, h2


if __name__ == "__main__":
    key = jax.random.PRNGKey(0)
    kx, kp = jax.random.split(key)

    B = 8
    hidden = 32

    x = jax.random.normal(kx, (B, D_IN), jnp.float32)
    w1, w2, w3, w4 = _init_params(kp, hidden)

    # One-time parameter prep (transpose + pad + bf16 cast), not per forward call.
    w1p, w2p, w3p, w4p = prepare_params(w1, w2, w3, w4)

    out, latent = simple_mnist_autoencoder(x, w1p, w2p, w3p, w4p, hidden=hidden)
    jax.block_until_ready((out, latent))

    ref_out, ref_lat = _reference(x, w1, w2, w3, w4)
    assert out.shape == (B, D_IN) and latent.shape == (B, hidden)
    # bf16 weights/activations with f32 accumulation -> loosen tolerance vs f32 ref.
    assert jnp.allclose(out, ref_out, atol=5e-2, rtol=5e-2)
    assert jnp.allclose(latent, ref_lat, atol=5e-2, rtol=5e-2)

    print("KERNEL_OK")
</pallas_src>

<mosaic_0001>
module attributes {stable_mosaic.version = 11 : i64} {
  func.func @_autoencoder_kernel(%arg0: i32, %arg1: memref<8x896xbf16, #tpu.memory_space<vmem>>, %arg2: memref<896x512xbf16, #tpu.memory_space<vmem>>, %arg3: memref<512x128xbf16, #tpu.memory_space<vmem>>, %arg4: memref<128x512xbf16, #tpu.memory_space<vmem>>, %arg5: memref<512x896xbf16, #tpu.memory_space<vmem>>, %arg6: memref<8x896xf32, #tpu.memory_space<vmem>>, %arg7: memref<8x128xf32, #tpu.memory_space<vmem>>) attributes {dimension_semantics = [#tpu.dimension_semantics<parallel>], iteration_bounds = array<i64: 1>, scalar_prefetch = 0 : i64, scratch_operands = 0 : i64, tpu.core_type = #tpu.core_type<tc>, window_params = [{transform_indices = @transform_0, window_bounds = array<i64: 8, 896>}, {pipeline_mode = #tpu.pipeline_mode<synchronous>, transform_indices = @transform_1, window_bounds = array<i64: 896, 512>}, {pipeline_mode = #tpu.pipeline_mode<synchronous>, transform_indices = @transform_2, window_bounds = array<i64: 512, 128>}, {pipeline_mode = #tpu.pipeline_mode<synchronous>, transform_indices = @transform_3, window_bounds = array<i64: 128, 512>}, {pipeline_mode = #tpu.pipeline_mode<synchronous>, transform_indices = @transform_4, window_bounds = array<i64: 512, 896>}, {transform_indices = @transform_5, window_bounds = array<i64: 8, 896>}, {transform_indices = @transform_6, window_bounds = array<i64: 8, 128>}]} {
    %c0 = arith.constant 0 : index
    %c0_0 = arith.constant 0 : index
    %0 = vector.load %arg1[%c0, %c0_0] : memref<8x896xbf16, #tpu.memory_space<vmem>>, vector<8x896xbf16>
    %c0_1 = arith.constant 0 : index
    %c0_2 = arith.constant 0 : index
    %1 = vector.load %arg2[%c0_1, %c0_2] : memref<896x512xbf16, #tpu.memory_space<vmem>>, vector<896x512xbf16>
    %cst = arith.constant dense<0.000000e+00> : vector<8x512xf32>
    %2 = tpu.matmul %0, %1, %cst {dimension_numbers = #tpu.dot_dimension_numbers<[1], [0], [0], [1], [0, 0, 1, 1], [], []>} : vector<8x896xbf16>, vector<896x512xbf16>, vector<8x512xf32> -> vector<8x512xf32>
    %cst_3 = arith.constant 0.000000e+00 : f32
    %3 = vector.broadcast %cst_3 : f32 to vector<8x512xf32>
    %4 = arith.maximumf %2, %3 : vector<8x512xf32>
    %5 = arith.truncf %4 : vector<8x512xf32> to vector<8x512xbf16>
    %c0_4 = arith.constant 0 : index
    %c0_5 = arith.constant 0 : index
    %6 = vector.load %arg3[%c0_4, %c0_5] : memref<512x128xbf16, #tpu.memory_space<vmem>>, vector<512x128xbf16>
    %cst_6 = arith.constant dense<0.000000e+00> : vector<8x128xf32>
    %7 = tpu.matmul %5, %6, %cst_6 {dimension_numbers = #tpu.dot_dimension_numbers<[1], [0], [0], [1], [0, 0, 1, 1], [], []>} : vector<8x512xbf16>, vector<512x128xbf16>, vector<8x128xf32> -> vector<8x128xf32>
    %cst_7 = arith.constant 0.000000e+00 : f32
    %8 = vector.broadcast %cst_7 : f32 to vector<8x128xf32>
    %9 = arith.maximumf %7, %8 : vector<8x128xf32>
    %c0_8 = arith.constant 0 : index
    %c0_9 = arith.constant 0 : index
    %10 = vector.load %arg7[%c0_8, %c0_9] : memref<8x128xf32, #tpu.memory_space<vmem>>, vector<8x128xf32>
    tpu.vector_store %arg7[%c0_8, %c0_9], %9 {strides = array<i32>} : memref<8x128xf32, #tpu.memory_space<vmem>>, vector<8x128xf32>,
    %11 = arith.truncf %9 : vector<8x128xf32> to vector<8x128xbf16>
    %c0_10 = arith.constant 0 : index
    %c0_11 = arith.constant 0 : index
    %12 = vector.load %arg4[%c0_10, %c0_11] : memref<128x512xbf16, #tpu.memory_space<vmem>>, vector<128x512xbf16>
    %cst_12 = arith.constant dense<0.000000e+00> : vector<8x512xf32>
    %13 = tpu.matmul %11, %12, %cst_12 {dimension_numbers = #tpu.dot_dimension_numbers<[1], [0], [0], [1], [0, 0, 1, 1], [], []>} : vector<8x128xbf16>, vector<128x512xbf16>, vector<8x512xf32> -> vector<8x512xf32>
    %cst_13 = arith.constant 0.000000e+00 : f32
    %14 = vector.broadcast %cst_13 : f32 to vector<8x512xf32>
    %15 = arith.maximumf %13, %14 : vector<8x512xf32>
    %16 = arith.truncf %15 : vector<8x512xf32> to vector<8x512xbf16>
    %c0_14 = arith.constant 0 : index
    %c0_15 = arith.constant 0 : index
    %17 = vector.load %arg5[%c0_14, %c0_15] : memref<512x896xbf16, #tpu.memory_space<vmem>>, vector<512x896xbf16>
    %cst_16 = arith.constant dense<0.000000e+00> : vector<8x896xf32>
    %18 = tpu.matmul %16, %17, %cst_16 {dimension_numbers = #tpu.dot_dimension_numbers<[1], [0], [0], [1], [0, 0, 1, 1], [], []>} : vector<8x512xbf16>, vector<512x896xbf16>, vector<8x896xf32> -> vector<8x896xf32>
    %cst_17 = arith.constant 0.000000e+00 : f32
    %19 = vector.broadcast %cst_17 : f32 to vector<8x896xf32>
    %20 = arith.maximumf %18, %19 : vector<8x896xf32>
    %c0_18 = arith.constant 0 : index
    %c0_19 = arith.constant 0 : index
    %21 = vector.load %arg6[%c0_18, %c0_19] : memref<8x896xf32, #tpu.memory_space<vmem>>, vector<8x896xf32>
    tpu.vector_store %arg6[%c0_18, %c0_19], %20 {strides = array<i32>} : memref<8x896xf32, #tpu.memory_space<vmem>>, vector<8x896xf32>,
    return
  }
  func.func @transform_0(%arg0: i32) -> (i32, i32) {
    %c0_i32 = arith.constant 0 : i32
    %c0_i32_0 = arith.constant 0 : i32
    return %arg0, %c0_i32 : i32, i32
  }
  func.func @transform_1(%arg0: i32) -> (i32, i32) {
    %c0_i32 = arith.constant 0 : i32
    %c0_i32_0 = arith.constant 0 : i32
    %c0_i32_1 = arith.constant 0 : i32
    return %c0_i32, %c0_i32_0 : i32, i32
  }
  func.func @transform_2(%arg0: i32) -> (i32, i32) {
    %c0_i32 = arith.constant 0 : i32
    %c0_i32_0 = arith.constant 0 : i32
    %c0_i32_1 = arith.constant 0 : i32
    return %c0_i32, %c0_i32_0 : i32, i32
  }
  func.func @transform_3(%arg0: i32) -> (i32, i32) {
    %c0_i32 = arith.constant 0 : i32
    %c0_i32_0 = arith.constant 0 : i32
    %c0_i32_1 = arith.constant 0 : i32
    return %c0_i32, %c0_i32_0 : i32, i32
  }
  func.func @transform_4(%arg0: i32) -> (i32, i32) {
    %c0_i32 = arith.constant 0 : i32
    %c0_i32_0 = arith.constant 0 : i32
    %c0_i32_1 = arith.constant 0 : i32
    return %c0_i32, %c0_i32_0 : i32, i32
  }
  func.func @transform_5(%arg0: i32) -> (i32, i32) {
    %c0_i32 = arith.constant 0 : i32
    %c0_i32_0 = arith.constant 0 : i32
    return %arg0, %c0_i32 : i32, i32
  }
  func.func @transform_6(%arg0: i32) -> (i32, i32) {
    %c0_i32 = arith.constant 0 : i32
    %c0_i32_0 = arith.constant 0 : i32
    return %arg0, %c0_i32 : i32, i32
  }
}

</mosaic_0001>

<bundles_post_ra>
// kernel: simple_mnist_autoencoder.1
= control target key start
LH: loop header
LB: loop body
LE: loop exit
PB: predicated region body
PF: predicated region fallthrough
CT: control target
= control target key end

     0   :  { %12 = vsyncpa [#allocation3], 0  ;;  %s5926_s0 = inlined_call_operand.vmem [shape: bf16[8,896], index: 0, kind: input, shape index: {}]   ;;  %s5927_s1 = inlined_call_operand.hbm [shape: bf16[896,512], index: 1, kind: input, shape index: {}]   ;;  %s5928_s2 = inlined_call_operand.hbm [shape: bf16[512,128], index: 2, kind: input, shape index: {}]   ;;  %s5929_s3 = inlined_call_operand.hbm [shape: bf16[128,512], index: 3, kind: input, shape index: {}]   ;;  %s5930_s4 = inlined_call_operand.hbm [shape: bf16[512,896], index: 4, kind: input, shape index: {}]   ;;  %s5931_s5 = inlined_call_operand.hbm [shape: f32[8,896], index: 5, kind: output, shape index: {0}]   ;;  %s5932_s6 = inlined_call_operand.hbm [shape: f32[8,128], index: 6, kind: output, shape index: {1}]  }
   0x1   :  { %13 = vsyncpa [#allocation6], 0 }
   0x2   :  { %14 = vsyncpa [#allocation9], 0 }
   0x3   :  { %15 = vsyncpa [#allocation4], 0 }
   0x4   :  { %16 = vsyncpa [#allocation12], 0  ;;  %s5729_s21 = smov [#allocation5]   ;;  %s5587_s25 = scalar_lea.hbm %s5928_s2, 4096 }
   0x5   :  { %s36_s22 = sshll.u32 %s5729_s21, 4  ;;  %p5588_p0 = scmp.ne.s32.totalorder %s5928_s2, %s5587_s25  ;;  %s37_s22 = int_to_ptr.vmem [resolvable:$true] %s36_s22 }
   0x6   :  { %p5591_p1 = scmp.lt.u32.totalorder %s5587_s25, %s5928_s2 }
   0x8   :  { %p5593_p2 = pnand %p5591_p1, %p5588_p0 }
   0xa   :  { %5596 = shalt.err (!%p5593_p2)
}
   0xb   :  { %s5597_s30 = scalar_lea.vmem %s37_s22, 4096  ;;  %p5602_p4 = scmp.lt.s32.totalorder %s37_s22, %s37_s22 }
   0xc   :  { %p5598_p3 = scmp.ne.s32.totalorder %s37_s22, %s5597_s30  ;;  %p5603_p5 = scmp.lt.s32.totalorder %s5597_s30, %s5597_s30 }
   0xe   :  { %p5604_p6 = por %p5603_p5, %p5602_p4 }
  0x10   :  { %p5605_p7 = pnand %p5604_p6, %p5598_p3 }
  0x12   :  { %5608 = shalt.err (!%p5605_p7)
}
  0x13   :  { %s5730_s7 = smov 64   ;;  %s5731_s8 = smov 4  }
  0x14   :  { %42 = dma.hbm_to_vmem [thread:$0]  %s5928_s2, 4096, %s37_s22, [#allocation6], %s5730_s7, %s5730_s7, %s5731_s8  }
  0x15   :  { %s5732_s11 = smov [#allocation2]   ;;  %s5609_s15 = scalar_lea.hbm %s5927_s1, 28672 }
  0x16   :  { %s24_s12 = sshll.u32 %s5732_s11, 4  ;;  %p5610_p8 = scmp.ne.s32.totalorder %s5927_s1, %s5609_s15  ;;  %s25_s12 = int_to_ptr.vmem [resolvable:$true] %s24_s12 }
  0x17   :  { %p5613_p9 = scmp.lt.u32.totalorder %s5609_s15, %s5927_s1 }
  0x19   :  { %p5615_p10 = pnand %p5613_p9, %p5610_p8 }
  0x1b   :  { %5618 = shalt.err (!%p5615_p10)
}
  0x1c   :  { %s5619_s20 = scalar_lea.vmem %s25_s12, 28672  ;;  %p5624_p12 = scmp.lt.s32.totalorder %s25_s12, %s25_s12 }
  0x1d   :  { %p5620_p11 = scmp.ne.s32.totalorder %s25_s12, %s5619_s20  ;;  %p5625_p13 = scmp.lt.s32.totalorder %s5619_s20, %s5619_s20 }
  0x1f   :  { %p5626_p0 = por %p5625_p13, %p5624_p12 }
  0x21   :  { %p5627_p1 = pnand %p5626_p0, %p5620_p11 }
  0x23   :  { %5630 = shalt.err (!%p5627_p1)
}
  0x24   :  { %s5733_s2 = smov 256   ;;  %s5734_s21 = smov 16  }
  0x25   :  { %30 = dma.hbm_to_vmem [thread:$0]  %s5927_s1, 28672, %s25_s12, [#allocation3], %s5733_s2, %s5733_s2, %s5734_s21  }
  0x26   :  { %s5735_s24 = smov [#allocation7]   ;;  %s5736_s26 = smov [#allocation8]  }
  0x27   :  { %s48_s25 = sshll.u32 %s5735_s24, 4  ;;  %s60_s27 = sshll.u32 %s5736_s26, 4  ;;  %s49_s25 = int_to_ptr.vmem [resolvable:$true] %s48_s25  ;;  %s5801_s27 = int_to_ptr.vmem [resolvable:$true] %s60_s27 }
  0x28   :  { %s5631_s30 = scalar_lea.hbm %s5929_s3, 4096 }
  0x29   :  { %p5632_p2 = scmp.ne.s32.totalorder %s5929_s3, %s5631_s30  ;;  %p5635_p3 = scmp.lt.u32.totalorder %s5631_s30, %s5929_s3 }
  0x2b   :  { %p5637_p4 = pnand %p5635_p3, %p5632_p2 }
  0x2d   :  { %5640 = shalt.err (!%p5637_p4)
}
  0x2e   :  { %s5641_s1 = scalar_lea.vmem %s49_s25, 4096  ;;  %p5646_p6 = scmp.lt.s32.totalorder %s49_s25, %s49_s25 }
  0x2f   :  { %p5642_p5 = scmp.ne.s32.totalorder %s49_s25, %s5641_s1  ;;  %p5647_p7 = scmp.lt.s32.totalorder %s5641_s1, %s5641_s1 }
  0x31   :  { %p5648_p8 = por %p5647_p7, %p5646_p6 }
  0x33   :  { %p5649_p9 = pnand %p5648_p8, %p5642_p5 }
  0x35   :  { %5652 = shalt.err (!%p5649_p9)
}
  0x36   :  { %54 = dma.hbm_to_vmem [thread:$0]  %s5929_s3, 4096, %s49_s25, [#allocation6], %s5733_s2, %s5733_s2, %s5734_s21  }
  0x37   :  { %s5653_s15 = scalar_lea.hbm %s5930_s4, 28672 }
  0x38   :  { %p5654_p10 = scmp.ne.s32.totalorder %s5930_s4, %s5653_s15  ;;  %p5657_p11 = scmp.lt.u32.totalorder %s5653_s15, %s5930_s4 }
  0x3a   :  { %p5659_p12 = pnand %p5657_p11, %p5654_p10 }
  0x3c   :  { %5662 = shalt.err (!%p5659_p12)
}
  0x3d   :  { %s5663_s20 = scalar_lea.vmem %s5801_s27, 28672  ;;  %p5668_p0 = scmp.lt.s32.totalorder %s5801_s27, %s5801_s27 }
  0x3e   :  { %p5664_p13 = scmp.ne.s32.totalorder %s5801_s27, %s5663_s20  ;;  %p5669_p1 = scmp.lt.s32.totalorder %s5663_s20, %s5663_s20 }
  0x40   :  { %p5670_p2 = por %p5669_p1, %p5668_p0 }
  0x42   :  { %p5671_p3 = pnand %p5670_p2, %p5664_p13 }
  0x44   :  { %5674 = shalt.err (!%p5671_p3)
}
  0x45   :  { %s5737_s3 = smov 448   ;;  %s5738_s2 = smov 28  }
  0x46   :  { %66 = dma.hbm_to_vmem [thread:$0]  %s5930_s4, 28672, %s5801_s27, [#allocation9], %s5737_s3, %s5737_s3, %s5738_s2  }
  0x47   :  { %5719 = dma.done.wait [#allocation3], 28672  }
  0x48   :  { %5720 = vsyncadd [#allocation3], 4294938624 }
  0x49   :  { %5721 = dma.done.wait [#allocation6], 8192  }
  0x4a   :  { %5722 = vsyncadd [#allocation6], 4294959104 }
  0x4b   :  { %5723 = dma.done.wait [#allocation9], 28672  }
  0x4c   :  { %5724 = vsyncadd [#allocation9], 4294938624  ;;  %v5739_v0 = vmov 0   ;;  %v4843_v1 = vld [vmem:[#allocation2 + $0x4] ss:$16 sps:$4 sm:$0xff]  }
  0x4d   :  { %1608 = vmatprep.mubr.bf16.mxu1 %v5739_v0  ;;  %v4845_v2 = vld [vmem:[#allocation2 + $0x604] ss:$16 sps:$4 sm:$0xff]   ;;  %1453 = vmatprep.subr.bf16.mxu0 %v4843_v1  ;;  %v4847_v3 = vld [vmem:[#allocation2] ss:$16 sps:$4 sm:$0xff]   ;;  %v4896_v34 = vld [vmem:[#allocation2 + $0xc] ss:$16 sps:$4 sm:$0xff]  }
  0x4e   :  { %v4848_v4 = vld [vmem:[#allocation2 + $0x600] ss:$16 sps:$4 sm:$0xff]   ;;  %1576 = vmatprep.subr.bf16.mxu1 %v4845_v2  ;;  %v4849_v5 = vld [vmem:[#allocation2 + $0x24] ss:$16 sps:$4 sm:$0xff]   ;;  %1454 = vmatpush1.bf16.msra.mxu0 %v4847_v3  ;;  %v4893_v35 = vld [vmem:[%s5926_s0 + $0x18] ss:$0 sps:$4 sm:$0xff]  }
  0x4f   :  { %1577 = vmatpush1.bf16.msra.mxu1 %v4848_v4  ;;  %v4851_v6 = vld [vmem:[#allocation2 + $0x624] ss:$16 sps:$4 sm:$0xff]   ;;  %v4853_v7 = vld [vmem:[#allocation2 + $0x20] ss:$16 sps:$4 sm:$0xff]   ;;  %1455 = vmatprep.subr.bf16.mxu0 %v4849_v5  ;;  %v4894_v36 = vld [vmem:[#allocation2 + $0x8] ss:$16 sps:$4 sm:$0xff]  }
  0x50   :  { %v4854_v8 = vld [vmem:[#allocation2 + $0x620] ss:$16 sps:$4 sm:$0xff]   ;;  %1578 = vmatprep.subr.bf16.mxu1 %v4851_v6  ;;  %v4855_v9 = vld [vmem:[#allocation2 + $0x44] ss:$16 sps:$4 sm:$0xff]   ;;  %v4902_v39 = vld [vmem:[#allocation2 + $0x2c] ss:$16 sps:$4 sm:$0xff]  }
  0x51   :  { %v4857_v10 = vld [vmem:[#allocation2 + $0x644] ss:$16 sps:$4 sm:$0xff]   ;;  %v4859_v11 = vld [vmem:[#allocation2 + $0x40] ss:$16 sps:$4 sm:$0xff]   ;;  %v4900_v40 = vld [vmem:[#allocation2 + $0x28] ss:$16 sps:$4 sm:$0xff]  }
  0x52   :  { %v4860_v12 = vld [vmem:[#allocation2 + $0x640] ss:$16 sps:$4 sm:$0xff]   ;;  %1456 = vmatpush1.bf16.msra.mxu0 %v4853_v7  ;;  %v4861_v13 = vld [vmem:[#allocation2 + $0x64] ss:$16 sps:$4 sm:$0xff]   ;;  %v4908_v43 = vld [vmem:[#allocation2 + $0x4c] ss:$16 sps:$4 sm:$0xff]  }
  0x53   :  { %1579 = vmatpush1.bf16.msra.mxu1 %v4854_v8  ;;  %1457 = vmatprep.subr.bf16.mxu0 %v4855_v9  ;;  %v4863_v14 = vld [vmem:[#allocation2 + $0x664] ss:$16 sps:$4 sm:$0xff]   ;;  %v4865_v15 = vld [vmem:[#allocation2 + $0x60] ss:$16 sps:$4 sm:$0xff]   ;;  %v4906_v44 = vld [vmem:[#allocation2 + $0x48] ss:$16 sps:$4 sm:$0xff]  }
  0x54   :  { %1580 = vmatprep.subr.bf16.mxu1 %v4857_v10  ;;  %v4866_v16 = vld [vmem:[#allocation2 + $0x660] ss:$16 sps:$4 sm:$0xff]   ;;  %v4867_v17 = vld [vmem:[#allocation2 + $0x84] ss:$16 sps:$4 sm:$0xff]   ;;  %v4914_v47 = vld [vmem:[#allocation2 + $0x6c] ss:$16 sps:$4 sm:$0xff]  }
  0x55   :  { %v4869_v18 = vld [vmem:[#allocation2 + $0x684] ss:$16 sps:$4 sm:$0xff]   ;;  %v4871_v19 = vld [vmem:[#allocation2 + $0x80] ss:$16 sps:$4 sm:$0xff]   ;;  %v4912_v48 = vld [vmem:[#allocation2 + $0x68] ss:$16 sps:$4 sm:$0xff]  }
  0x56   :  { %1458 = vmatpush1.bf16.msra.mxu0 %v4859_v11  ;;  %v4872_v20 = vld [vmem:[#allocation2 + $0x680] ss:$16 sps:$4 sm:$0xff]   ;;  %v4873_v21 = vld [vmem:[#allocation2 + $0xa4] ss:$16 sps:$4 sm:$0xff]   ;;  %v4920_v53 = vld [vmem:[#allocation2 + $0x8c] ss:$16 sps:$4 sm:$0xff]  }
  0x57   :  { %1581 = vmatpush1.bf16.msra.mxu1 %v4860_v12  ;;  %1459 = vmatprep.subr.bf16.mxu0 %v4861_v13  ;;  %v4875_v22 = vld [vmem:[#allocation2 + $0x6a4] ss:$16 sps:$4 sm:$0xff]   ;;  %v4877_v23 = vld [vmem:[#allocation2 + $0xa0] ss:$16 sps:$4 sm:$0xff]   ;;  %v4918_v54 = vld [vmem:[#allocation2 + $0x88] ss:$16 sps:$4 sm:$0xff]  }
  0x58   :  { %1582 = vmatprep.subr.bf16.mxu1 %v4863_v14  ;;  %v4878_v24 = vld [vmem:[#allocation2 + $0x6a0] ss:$16 sps:$4 sm:$0xff]   ;;  %v4879_v25 = vld [vmem:[#allocation2 + $0xc4] ss:$16 sps:$4 sm:$0xff]   ;;  %v4926_v57 = vld [vmem:[#allocation2 + $0xac] ss:$16 sps:$4 sm:$0xff]  }
  0x59   :  { %v4881_v26 = vld [vmem:[#allocation2 + $0x6c4] ss:$16 sps:$4 sm:$0xff]   ;;  %v4883_v27 = vld [vmem:[#allocation2 + $0xc0] ss:$16 sps:$4 sm:$0xff]   ;;  %v4924_v58 = vld [vmem:[#allocation2 + $0xa8] ss:$16 sps:$4 sm:$0xff]  }
  0x5a   :  { %1460 = vmatpush1.bf16.msra.mxu0 %v4865_v15  ;;  %v4884_v28 = vld [vmem:[#allocation2 + $0x6c0] ss:$16 sps:$4 sm:$0xff]   ;;  %v4885_v29 = vld [vmem:[#allocation2 + $0xe4] ss:$16 sps:$4 sm:$0xff]   ;;  %v4932_v61 = vld [vmem:[#allocation2 + $0xcc] ss:$16 sps:$4 sm:$0xff]  }
  0x5b   :  { %1583 = vmatpush1.bf16.msra.mxu1 %v4866_v16  ;;  %1461 = vmatprep.subr.bf16.mxu0 %v4867_v17  ;;  %v4887_v30 = vld [vmem:[#allocation2 + $0x6e4] ss:$16 sps:$4 sm:$0xff]   ;;  %v4889_v31 = vld [vmem:[#allocation2 + $0xe0] ss:$16 sps:$4 sm:$0xff]   ;;  %v4930_v62 = vld [vmem:[#allocation2 + $0xc8] ss:$16 sps:$4 sm:$0xff]  }
  0x5c   :  { %1584 = vmatprep.subr.bf16.mxu1 %v4869_v18  ;;  %v4890_v32 = vld [vmem:[#allocation2 + $0x6e0] ss:$16 sps:$4 sm:$0xff]   ;;  %v4891_v33 = vld [vmem:[#allocation2 + $0x104] ss:$16 sps:$4 sm:$0xff]   ;;  %v4938_v2 = vld [vmem:[#allocation2 + $0xec] ss:$16 sps:$4 sm:$0xff]  }
  0x5d   :  { %v4897_v37 = vld [vmem:[#allocation2 + $0x100] ss:$16 sps:$4 sm:$0xff]   ;;  %v4898_v38 = vld [vmem:[#allocation2 + $0x124] ss:$16 sps:$4 sm:$0xff]   ;;  %v4936_v3 = vld [vmem:[#allocation2 + $0xe8] ss:$16 sps:$4 sm:$0xff]  }
  0x5e   :  { %1462 = vmatpush1.bf16.msra.mxu0 %v4871_v19  ;;  %v4903_v41 = vld [vmem:[#allocation2 + $0x120] ss:$16 sps:$4 sm:$0xff]   ;;  %v4904_v42 = vld [vmem:[#allocation2 + $0x144] ss:$16 sps:$4 sm:$0xff]   ;;  %v4947_v6 = vld [vmem:[#allocation2 + $0x10c] ss:$16 sps:$4 sm:$0xff]  }
  0x5f   :  { %1585 = vmatpush1.bf16.msra.mxu1 %v4872_v20  ;;  %1463 = vmatprep.subr.bf16.mxu0 %v4873_v21  ;;  %v4909_v45 = vld [vmem:[#allocation2 + $0x140] ss:$16 sps:$4 sm:$0xff]   ;;  %v4910_v46 = vld [vmem:[#allocation2 + $0x164] ss:$16 sps:$4 sm:$0xff]   ;;  %v4945_v9 = vld [vmem:[#allocation2 + $0x108] ss:$16 sps:$4 sm:$0xff]  }
  0x60   :  { %1586 = vmatprep.subr.bf16.mxu1 %v4875_v22  ;;  %v80_v49 = vld [vmem:[%s5926_s0] sm:$0xff]  ;;  %v4953_v11 = vld [vmem:[#allocation2 + $0x12c] ss:$16 sps:$4 sm:$0xff]   ;;  %v4951_v13 = vld [vmem:[#allocation2 + $0x128] ss:$16 sps:$4 sm:$0xff]  }
  0x61   :  { %v4915_v50 = vld [vmem:[#allocation2 + $0x160] ss:$16 sps:$4 sm:$0xff]   ;;  %v4916_v51 = vld [vmem:[#allocation2 + $0x184] ss:$16 sps:$4 sm:$0xff]   ;;  %v4190_v52 = vcombine.high %v80_v49, %v80_v49  ;;  %v5839_v7 = vcombine.low %v80_v49, %v80_v49  ;;  %v4959_v15 = vld [vmem:[#allocation2 + $0x14c] ss:$16 sps:$4 sm:$0xff]  }
  0x62   :  { %1464 = vmatpush1.bf16.msra.mxu0 %v4877_v23  ;;  %v4921_v55 = vld [vmem:[#allocation2 + $0x180] ss:$16 sps:$4 sm:$0xff]   ;;  %v4922_v56 = vld [vmem:[#allocation2 + $0x1a4] ss:$16 sps:$4 sm:$0xff]   ;;  %v4957_v17 = vld [vmem:[#allocation2 + $0x148] ss:$16 sps:$4 sm:$0xff]  }
  0x63   :  { %1587 = vmatpush1.bf16.msra.mxu1 %v4878_v24  ;;  %1465 = vmatprep.subr.bf16.mxu0 %v4879_v25  ;;  %v4927_v59 = vld [vmem:[#allocation2 + $0x1a0] ss:$16 sps:$4 sm:$0xff]   ;;  %v4928_v60 = vld [vmem:[#allocation2 + $0x1c4] ss:$16 sps:$4 sm:$0xff]   ;;  %v4965_v19 = vld [vmem:[#allocation2 + $0x16c] ss:$16 sps:$4 sm:$0xff]  }
  0x64   :  { %1588 = vmatprep.subr.bf16.mxu1 %v4881_v26  ;;  %1485 = vmatprep.mubr.bf16.mxu0 %v4190_v52  ;;  %v4933_v63 = vld [vmem:[#allocation2 + $0x1c0] ss:$16 sps:$4 sm:$0xff]   ;;  %v4934_v1 = vld [vmem:[#allocation2 + $0x1e4] ss:$16 sps:$4 sm:$0xff]   ;;  %v4963_v21 = vld [vmem:[#allocation2 + $0x168] ss:$16 sps:$4 sm:$0xff]  }
  0x65   :  { %v4939_v4 = vld [vmem:[#allocation2 + $0x1e0] ss:$16 sps:$4 sm:$0xff]   ;;  %v4944_v5 = vld [vmem:[#allocation2 + $0x204] ss:$16 sps:$4 sm:$0xff]   ;;  %v4971_v23 = vld [vmem:[#allocation2 + $0x18c] ss:$16 sps:$4 sm:$0xff]  }
  0x66   :  { %1466 = vmatpush1.bf16.msra.mxu0 %v4883_v27  ;;  %v4942_v8 = vld [vmem:[#allocation2 + $0x200] ss:$16 sps:$4 sm:$0xff]   ;;  %v4950_v10 = vld [vmem:[#allocation2 + $0x224] ss:$16 sps:$4 sm:$0xff]   ;;  %v4969_v25 = vld [vmem:[#allocation2 + $0x188] ss:$16 sps:$4 sm:$0xff]  }
  0x67   :  { %1589 = vmatpush1.bf16.msra.mxu1 %v4884_v28  ;;  %1467 = vmatprep.subr.bf16.mxu0 %v4885_v29  ;;  %v4948_v12 = vld [vmem:[#allocation2 + $0x220] ss:$16 sps:$4 sm:$0xff]   ;;  %v4956_v14 = vld [vmem:[#allocation2 + $0x244] ss:$16 sps:$4 sm:$0xff]   ;;  %v4977_v27 = vld [vmem:[#allocation2 + $0x1ac] ss:$16 sps:$4 sm:$0xff]  }
  0x68   :  { %1590 = vmatprep.subr.bf16.mxu1 %v4887_v30  ;;  %v4954_v16 = vld [vmem:[#allocation2 + $0x240] ss:$16 sps:$4 sm:$0xff]   ;;  %v4962_v18 = vld [vmem:[#allocation2 + $0x264] ss:$16 sps:$4 sm:$0xff]   ;;  %v4975_v29 = vld [vmem:[#allocation2 + $0x1a8] ss:$16 sps:$4 sm:$0xff]  }
  0x69   :  { %v4960_v20 = vld [vmem:[#allocation2 + $0x260] ss:$16 sps:$4 sm:$0xff]   ;;  %v4968_v22 = vld [vmem:[#allocation2 + $0x284] ss:$16 sps:$4 sm:$0xff]   ;;  %v5007_v49 = vld [vmem:[#allocation2 + $0x24c] ss:$16 sps:$4 sm:$0xff]  }
  0x6a   :  { %1468 = vmatpush1.bf16.msra.mxu0 %v4889_v31  ;;  %v4966_v24 = vld [vmem:[#allocation2 + $0x280] ss:$16 sps:$4 sm:$0xff]   ;;  %v4974_v26 = vld [vmem:[#allocation2 + $0x2a4] ss:$16 sps:$4 sm:$0xff]   ;;  %v4983_v31 = vld [vmem:[#allocation2 + $0x1cc] ss:$16 sps:$4 sm:$0xff]  }
  0x6b   :  { %1591 = vmatpush1.bf16.msra.mxu1 %v4890_v32  ;;  %1469 = vmatprep.subr.bf16.mxu0 %v4891_v33  ;;  %v4972_v28 = vld [vmem:[#allocation2 + $0x2a0] ss:$16 sps:$4 sm:$0xff]   ;;  %v4980_v30 = vld [vmem:[#allocation2 + $0x2c4] ss:$16 sps:$4 sm:$0xff]   ;;  %v5845_v32 = vld [vmem:[%s5926_s0 + $0x8] sm:$0xff] }
  0x6c   :  { %1617 = vmatprep.subr.bf16.mxu1 %v4896_v34  ;;  %v4978_v33 = vld [vmem:[#allocation2 + $0x2c0] ss:$16 sps:$4 sm:$0xff]   ;;  %v4981_v34 = vld [vmem:[#allocation2 + $0x1c8] ss:$16 sps:$4 sm:$0xff]  }
  0x6e   :  { %1609 = vmatmul.mubr.bf16.vlgmr.msra.gmra.mrb[0].mxu1 %v4893_v35  ;;  %1470 = vmatpush1.bf16.msra.mxu0 %v4897_v37  ;;  %v4192_v35 = vcombine.high %v5845_v32, %v5845_v32  ;;  %v4989_v37 = vld [vmem:[#allocation2 + $0x1ec] ss:$16 sps:$4 sm:$0xff]  }
  0x6f   :  { %1618 = vmatpush1.bf16.msra.mxu1 %v4894_v36  ;;  %1471 = vmatprep.subr.bf16.mxu0 %v4898_v38  ;;  %v4986_v36 = vld [vmem:[#allocation2 + $0x2e4] ss:$16 sps:$4 sm:$0xff]   ;;  %v4984_v38 = vld [vmem:[#allocation2 + $0x2e0] ss:$16 sps:$4 sm:$0xff]  }
  0x70   :  { %1619 = vmatprep.subr.bf16.mxu1 %v4902_v39  ;;  %1649 = vmatprep.mubr.bf16.mxu1 %v4190_v52  ;;  %v4987_v39 = vld [vmem:[#allocation2 + $0x1e8] ss:$16 sps:$4 sm:$0xff]   ;;  %v5010_v52 = vld [vmem:[#allocation2 + $0x364] ss:$16 sps:$4 sm:$0xff]  }
  0x72   :  { %1472 = vmatpush1.bf16.msra.mxu0 %v4903_v41  ;;  %v4995_v41 = vld [vmem:[#allocation2 + $0x20c] ss:$16 sps:$4 sm:$0xff]  }
  0x73   :  { %1620 = vmatpush1.bf16.msra.mxu1 %v4900_v40  ;;  %1473 = vmatprep.subr.bf16.mxu0 %v4904_v42  ;;  %v4992_v40 = vld [vmem:[#allocation2 + $0x304] ss:$16 sps:$4 sm:$0xff]   ;;  %v4990_v42 = vld [vmem:[#allocation2 + $0x300] ss:$16 sps:$4 sm:$0xff]  }
  0x74   :  { %1621 = vmatprep.subr.bf16.mxu1 %v4908_v43  ;;  %v4993_v43 = vld [vmem:[#allocation2 + $0x208] ss:$16 sps:$4 sm:$0xff]  }
  0x76   :  { %1474 = vmatpush1.bf16.msra.mxu0 %v4909_v45  ;;  %v5001_v45 = vld [vmem:[#allocation2 + $0x22c] ss:$16 sps:$4 sm:$0xff]  }
  0x77   :  { %1622 = vmatpush1.bf16.msra.mxu1 %v4906_v44  ;;  %1475 = vmatprep.subr.bf16.mxu0 %v4910_v46  ;;  %v4998_v44 = vld [vmem:[#allocation2 + $0x324] ss:$16 sps:$4 sm:$0xff]   ;;  %v4996_v46 = vld [vmem:[#allocation2 + $0x320] ss:$16 sps:$4 sm:$0xff]  }
  0x78   :  { %1623 = vmatprep.subr.bf16.mxu1 %v4914_v47  ;;  %v4999_v47 = vld [vmem:[#allocation2 + $0x228] ss:$16 sps:$4 sm:$0xff]  }
  0x7a   :  { %1476 = vmatpush1.bf16.msra.mxu0 %v4915_v50  ;;  %v5002_v50 = vld [vmem:[#allocation2 + $0x340] ss:$16 sps:$4 sm:$0xff]  }
  0x7b   :  { %1624 = vmatpush1.bf16.msra.mxu1 %v4912_v48  ;;  %1477 = vmatprep.subr.bf16.mxu0 %v4916_v51  ;;  %v5004_v48 = vld [vmem:[#allocation2 + $0x344] ss:$16 sps:$4 sm:$0xff]   ;;  %v5005_v51 = vld [vmem:[#allocation2 + $0x248] ss:$16 sps:$4 sm:$0xff]  }
  0x7c   :  { %1625 = vmatprep.subr.bf16.mxu1 %v4920_v53  ;;  %v5013_v53 = vld [vmem:[#allocation2 + $0x26c] ss:$16 sps:$4 sm:$0xff]  }
  0x7e   :  { %1478 = vmatpush1.bf16.msra.mxu0 %v4921_v55  ;;  %v5011_v55 = vld [vmem:[#allocation2 + $0x268] ss:$16 sps:$4 sm:$0xff]  }
  0x7f   :  { %1626 = vmatpush1.bf16.msra.mxu1 %v4918_v54  ;;  %1479 = vmatprep.subr.bf16.mxu0 %v4922_v56  ;;  %v5008_v54 = vld [vmem:[#allocation2 + $0x360] ss:$16 sps:$4 sm:$0xff]   ;;  %v5016_v56 = vld [vmem:[#allocation2 + $0x384] ss:$16 sps:$4 sm:$0xff]  }
  0x80   :  { %1627 = vmatprep.subr.bf16.mxu1 %v4926_v57  ;;  %v5019_v57 = vld [vmem:[#allocation2 + $0x28c] ss:$16 sps:$4 sm:$0xff]  }
  0x82   :  { %1480 = vmatpush1.bf16.msra.mxu0 %v4927_v59  ;;  %v5017_v59 = vld [vmem:[#allocation2 + $0x288] ss:$16 sps:$4 sm:$0xff]  }
  0x83   :  { %1628 = vmatpush1.bf16.msra.mxu1 %v4924_v58  ;;  %1481 = vmatprep.subr.bf16.mxu0 %v4928_v60  ;;  %v5014_v58 = vld [vmem:[#allocation2 + $0x380] ss:$16 sps:$4 sm:$0xff]   ;;  %v5022_v60 = vld [vmem:[#allocation2 + $0x3a4] ss:$16 sps:$4 sm:$0xff]  }
  0x84   :  { %1629 = vmatprep.subr.bf16.mxu1 %v4932_v61  ;;  %v5025_v61 = vld [vmem:[#allocation2 + $0x2ac] ss:$16 sps:$4 sm:$0xff]  }
  0x86   :  { %1482 = vmatpush1.bf16.msra.mxu0 %v4933_v63  ;;  %v5023_v63 = vld [vmem:[#allocation2 + $0x2a8] ss:$16 sps:$4 sm:$0xff]  }
  0x87   :  { %1630 = vmatpush1.bf16.msra.mxu1 %v4930_v62  ;;  %1483 = vmatprep.subr.bf16.mxu0 %v4934_v1  ;;  %v5020_v62 = vld [vmem:[#allocation2 + $0x3a0] ss:$16 sps:$4 sm:$0xff]   ;;  %v5028_v1 = vld [vmem:[#allocation2 + $0x3c4] ss:$16 sps:$4 sm:$0xff]  }
  0x88   :  { %1631 = vmatprep.subr.bf16.mxu1 %v4938_v2  ;;  %v5031_v2 = vld [vmem:[#allocation2 + $0x2cc] ss:$16 sps:$4 sm:$0xff]  }
  0x8a   :  { %1484 = vmatpush1.bf16.msra.mxu0 %v4939_v4  ;;  %v5029_v4 = vld [vmem:[#allocation2 + $0x2c8] ss:$16 sps:$4 sm:$0xff]  }
  0x8b   :  { %1632 = vmatpush1.bf16.msra.mxu1 %v4936_v3  ;;  %1494 = vmatprep.subr.bf16.mxu0 %v4944_v5  ;;  %v5026_v3 = vld [vmem:[#allocation2 + $0x3c0] ss:$16 sps:$4 sm:$0xff]   ;;  %v5034_v5 = vld [vmem:[#allocation2 + $0x3e4] ss:$16 sps:$4 sm:$0xff]  }
  0x8c   :  { %1633 = vmatprep.subr.bf16.mxu1 %v4947_v6  ;;  %v5037_v6 = vld [vmem:[#allocation2 + $0x2ec] ss:$16 sps:$4 sm:$0xff]  }
  0x8d   :  { %1486 = vmatmul.mubr.bf16.vlgmr.msra.gmra.mrb[0].mxu0 %v5839_v7 }
  0x8e   :  { %1495 = vmatpush1.bf16.msra.mxu0 %v4942_v8  ;;  %1526 = vmatprep.mubr.bf16.mxu0 %v4192_v35  ;;  %v5035_v8 = vld [vmem:[#allocation2 + $0x2e8] ss:$16 sps:$4 sm:$0xff]  }
  0x8f   :  { %1634 = vmatpush1.bf16.msra.mxu1 %v4945_v9  ;;  %1496 = vmatprep.subr.bf16.mxu0 %v4950_v10  ;;  %v5042_v9 = vld [vmem:[#allocation2 + $0x404] ss:$16 sps:$4 sm:$0xff]   ;;  %v5045_v10 = vld [vmem:[#allocation2 + $0x30c] ss:$16 sps:$4 sm:$0xff]  }
  0x90   :  { %1635 = vmatprep.subr.bf16.mxu1 %v4953_v11  ;;  %v5852_v11 = vcombine.low %v5845_v32, %v5845_v32  ;;  %v5072_v32 = vld [vmem:[#allocation2 + $0x4a4] ss:$16 sps:$4 sm:$0xff]  }
  0x92   :  { %1497 = vmatpush1.bf16.msra.mxu0 %v4948_v12  ;;  %v5040_v12 = vld [vmem:[#allocation2 + $0x400] ss:$16 sps:$4 sm:$0xff]  }
  0x93   :  { %1636 = vmatpush1.bf16.msra.mxu1 %v4951_v13  ;;  %1498 = vmatprep.subr.bf16.mxu0 %v4956_v14  ;;  %v5043_v13 = vld [vmem:[#allocation2 + $0x308] ss:$16 sps:$4 sm:$0xff]   ;;  %v5048_v14 = vld [vmem:[#allocation2 + $0x424] ss:$16 sps:$4 sm:$0xff]  }
  0x94   :  { %1637 = vmatprep.subr.bf16.mxu1 %v4959_v15  ;;  %v5051_v15 = vld [vmem:[#allocation2 + $0x32c] ss:$16 sps:$4 sm:$0xff]  }
  0x96   :  { %1499 = vmatpush1.bf16.msra.mxu0 %v4954_v16  ;;  %v5857_v16 = vld [vmem:[%s5926_s0 + $0x10] sm:$0xff] }
  0x97   :  { %1638 = vmatpush1.bf16.msra.mxu1 %v4957_v17  ;;  %1500 = vmatprep.subr.bf16.mxu0 %v4962_v18  ;;  %v5861_v17 = vcombine.high %v5857_v16, %v5857_v16  ;;  %v5046_v18 = vld [vmem:[#allocation2 + $0x420] ss:$16 sps:$4 sm:$0xff]  }
  0x98   :  { %1639 = vmatprep.subr.bf16.mxu1 %v4965_v19  ;;  %v5049_v19 = vld [vmem:[#allocation2 + $0x328] ss:$16 sps:$4 sm:$0xff]  }
  0x9a   :  { %1501 = vmatpush1.bf16.msra.mxu0 %v4960_v20  ;;  %v5054_v20 = vld [vmem:[#allocation2 + $0x444] ss:$16 sps:$4 sm:$0xff]  }
  0x9b   :  { %1640 = vmatpush1.bf16.msra.mxu1 %v4963_v21  ;;  %1502 = vmatprep.subr.bf16.mxu0 %v4968_v22  ;;  %v5057_v21 = vld [vmem:[#allocation2 + $0x34c] ss:$16 sps:$4 sm:$0xff]   ;;  %v5052_v22 = vld [vmem:[#allocation2 + $0x440] ss:$16 sps:$4 sm:$0xff]  }
  0x9c   :  { %1641 = vmatprep.subr.bf16.mxu1 %v4971_v23  ;;  %v5055_v23 = vld [vmem:[#allocation2 + $0x348] ss:$16 sps:$4 sm:$0xff]  }
  0x9e   :  { %1503 = vmatpush1.bf16.msra.mxu0 %v4966_v24  ;;  %v5060_v24 = vld [vmem:[#allocation2 + $0x464] ss:$16 sps:$4 sm:$0xff]  }
  0x9f   :  { %1642 = vmatpush1.bf16.msra.mxu1 %v4969_v25  ;;  %1504 = vmatprep.subr.bf16.mxu0 %v4974_v26  ;;  %v5063_v25 = vld [vmem:[#allocation2 + $0x36c] ss:$16 sps:$4 sm:$0xff]   ;;  %v5058_v26 = vld [vmem:[#allocation2 + $0x460] ss:$16 sps:$4 sm:$0xff]  }
  0xa0   :  { %1643 = vmatprep.subr.bf16.mxu1 %v4977_v27  ;;  %v5061_v27 = vld [vmem:[#allocation2 + $0x368] ss:$16 sps:$4 sm:$0xff]  }
  0xa2   :  { %1505 = vmatpush1.bf16.msra.mxu0 %v4972_v28  ;;  %v5066_v28 = vld [vmem:[#allocation2 + $0x484] ss:$16 sps:$4 sm:$0xff]  }
  0xa3   :  { %1644 = vmatpush1.bf16.msra.mxu1 %v4975_v29  ;;  %1506 = vmatprep.subr.bf16.mxu0 %v4980_v30  ;;  %v5069_v29 = vld [vmem:[#allocation2 + $0x38c] ss:$16 sps:$4 sm:$0xff]   ;;  %v5064_v30 = vld [vmem:[#allocation2 + $0x480] ss:$16 sps:$4 sm:$0xff]  }
  0xa4   :  { %1645 = vmatprep.subr.bf16.mxu1 %v4983_v31  ;;  %v5067_v31 = vld [vmem:[#allocation2 + $0x388] ss:$16 sps:$4 sm:$0xff]  }
  0xa6   :  { %1507 = vmatpush1.bf16.msra.mxu0 %v4978_v33  ;;  %v5075_v33 = vld [vmem:[#allocation2 + $0x3ac] ss:$16 sps:$4 sm:$0xff]  }
  0xa7   :  { %1646 = vmatpush1.bf16.msra.mxu1 %v4981_v34  ;;  %1508 = vmatprep.subr.bf16.mxu0 %v4986_v36  ;;  %v5070_v34 = vld [vmem:[#allocation2 + $0x4a0] ss:$16 sps:$4 sm:$0xff]   ;;  %v5078_v36 = vld [vmem:[#allocation2 + $0x4c4] ss:$16 sps:$4 sm:$0xff]  }
  0xa8   :  { %1647 = vmatprep.subr.bf16.mxu1 %v4989_v37  ;;  %v5081_v37 = vld [vmem:[#allocation2 + $0x3cc] ss:$16 sps:$4 sm:$0xff]  }
  0xaa   :  { %1509 = vmatpush1.bf16.msra.mxu0 %v4984_v38  ;;  %v5076_v38 = vld [vmem:[#allocation2 + $0x4c0] ss:$16 sps:$4 sm:$0xff]  }
  0xab   :  { %1648 = vmatpush1.bf16.msra.mxu1 %v4987_v39  ;;  %1510 = vmatprep.subr.bf16.mxu0 %v4992_v40  ;;  %v5079_v39 = vld [vmem:[#allocation2 + $0x3c8] ss:$16 sps:$4 sm:$0xff]   ;;  %v5084_v40 = vld [vmem:[#allocation2 + $0x4e4] ss:$16 sps:$4 sm:$0xff]  }
  0xac   :  { %1658 = vmatprep.subr.bf16.mxu1 %v4995_v41  ;;  %v5087_v41 = vld [vmem:[#allocation2 + $0x3ec] ss:$16 sps:$4 sm:$0xff]  }
  0xae   :  { %1650 = vmatmul.mubr.bf16.vlgmr.msra.gmra.mrb[4].mxu1 %v5839_v7  ;;  %1511 = vmatpush1.bf16.msra.mxu0 %v4990_v42  ;;  %v5032_v7 = vld [vmem:[#allocation2 + $0x3e0] ss:$16 sps:$4 sm:$0xff]  }
  0xaf   :  { %1659 = vmatpush1.bf16.msra.mxu1 %v4993_v43  ;;  %1512 = vmatprep.subr.bf16.mxu0 %v4998_v44  ;;  %v5082_v42 = vld [vmem:[#allocation2 + $0x4e0] ss:$16 sps:$4 sm:$0xff]   ;;  %v5085_v43 = vld [vmem:[#allocation2 + $0x3e8] ss:$16 sps:$4 sm:$0xff]   ;;  %v5090_v44 = vld [vmem:[#allocation2 + $0x504] ss:$16 sps:$4 sm:$0xff]  }
  0xb0   :  { %1660 = vmatprep.subr.bf16.mxu1 %v5001_v45  ;;  %1690 = vmatprep.mubr.bf16.mxu1 %v4192_v35  ;;  %v5073_v35 = vld [vmem:[#allocation2 + $0x3a8] ss:$16 sps:$4 sm:$0xff]   ;;  %v5093_v45 = vld [vmem:[#allocation2 + $0x40c] ss:$16 sps:$4 sm:$0xff]  }
  0xb2   :  { %1513 = vmatpush1.bf16.msra.mxu0 %v4996_v46  ;;  %v5088_v46 = vld [vmem:[#allocation2 + $0x500] ss:$16 sps:$4 sm:$0xff]  }
  0xb3   :  { %1661 = vmatpush1.bf16.msra.mxu1 %v4999_v47  ;;  %1514 = vmatprep.subr.bf16.mxu0 %v5004_v48  ;;  %v5091_v47 = vld [vmem:[#allocation2 + $0x408] ss:$16 sps:$4 sm:$0xff]   ;;  %v5096_v48 = vld [vmem:[#allocation2 + $0x524] ss:$16 sps:$4 sm:$0xff]  }
  0xb4   :  { %1662 = vmatprep.subr.bf16.mxu1 %v5007_v49  ;;  %v5099_v49 = vld [vmem:[#allocation2 + $0x42c] ss:$16 sps:$4 sm:$0xff]  }
  0xb6   :  { %1515 = vmatpush1.bf16.msra.mxu0 %v5002_v50  ;;  %v5094_v50 = vld [vmem:[#allocation2 + $0x520] ss:$16 sps:$4 sm:$0xff]  }
  0xb7   :  { %1663 = vmatpush1.bf16.msra.mxu1 %v5005_v51  ;;  %1516 = vmatprep.subr.bf16.mxu0 %v5010_v52  ;;  %v5097_v51 = vld [vmem:[#allocation2 + $0x428] ss:$16 sps:$4 sm:$0xff]   ;;  %v5102_v52 = vld [vmem:[#allocation2 + $0x544] ss:$16 sps:$4 sm:$0xff]  }
  0xb8   :  { %1664 = vmatprep.subr.bf16.mxu1 %v5013_v53  ;;  %v5105_v53 = vld [vmem:[#allocation2 + $0x44c] ss:$16 sps:$4 sm:$0xff]  }
  0xba   :  { %1517 = vmatpush1.bf16.msra.mxu0 %v5008_v54  ;;  %v5100_v54 = vld [vmem:[#allocation2 + $0x540] ss:$16 sps:$4 sm:$0xff]  }
  0xbb   :  { %1665 = vmatpush1.bf16.msra.mxu1 %v5011_v55  ;;  %1518 = vmatprep.subr.bf16.mxu0 %v5016_v56  ;;  %v5103_v55 = vld [vmem:[#allocation2 + $0x448] ss:$16 sps:$4 sm:$0xff]   ;;  %v5108_v56 = vld [vmem:[#allocation2 + $0x564] ss:$16 sps:$4 sm:$0xff]  }
  0xbc   :  { %1666 = vmatprep.subr.bf16.mxu1 %v5019_v57  ;;  %v5111_v57 = vld [vmem:[#allocation2 + $0x46c] ss:$16 sps:$4 sm:$0xff]  }
  0xbe   :  { %1519 = vmatpush1.bf16.msra.mxu0 %v5014_v58  ;;  %v5106_v58 = vld [vmem:[#allocation2 + $0x560] ss:$16 sps:$4 sm:$0xff]  }
  0xbf   :  { %1667 = vmatpush1.bf16.msra.mxu1 %v5017_v59  ;;  %1520 = vmatprep.subr.bf16.mxu0 %v5022_v60  ;;  %v5109_v59 = vld [vmem:[#allocation2 + $0x468] ss:$16 sps:$4 sm:$0xff]   ;;  %v5114_v60 = vld [vmem:[#allocation2 + $0x584] ss:$16 sps:$4 sm:$0xff]  }
  0xc0   :  { %1668 = vmatprep.subr.bf16.mxu1 %v5025_v61  ;;  %v5117_v61 = vld [vmem:[#allocation2 + $0x48c] ss:$16 sps:$4 sm:$0xff]  }
  0xc2   :  { %1521 = vmatpush1.bf16.msra.mxu0 %v5020_v62  ;;  %v5112_v62 = vld [vmem:[#allocation2 + $0x580] ss:$16 sps:$4 sm:$0xff]  }
  0xc3   :  { %1669 = vmatpush1.bf16.msra.mxu1 %v5023_v63  ;;  %1522 = vmatprep.subr.bf16.mxu0 %v5028_v1  ;;  %v5115_v63 = vld [vmem:[#allocation2 + $0x488] ss:$16 sps:$4 sm:$0xff]   ;;  %v5120_v1 = vld [vmem:[#allocation2 + $0x5a4] ss:$16 sps:$4 sm:$0xff]  }
  0xc4   :  { %1670 = vmatprep.subr.bf16.mxu1 %v5031_v2  ;;  %v5123_v2 = vld [vmem:[#allocation2 + $0x4ac] ss:$16 sps:$4 sm:$0xff]  }
  0xc6   :  { %1523 = vmatpush1.bf16.msra.mxu0 %v5026_v3  ;;  %v5118_v3 = vld [vmem:[#allocation2 + $0x5a0] ss:$16 sps:$4 sm:$0xff]  }
  0xc7   :  { %1671 = vmatpush1.bf16.msra.mxu1 %v5029_v4  ;;  %1524 = vmatprep.subr.bf16.mxu0 %v5034_v5  ;;  %v5121_v4 = vld [vmem:[#allocation2 + $0x4a8] ss:$16 sps:$4 sm:$0xff]   ;;  %v5126_v5 = vld [vmem:[#allocation2 + $0x5c4] ss:$16 sps:$4 sm:$0xff]  }
  0xc8   :  { %1672 = vmatprep.subr.bf16.mxu1 %v5037_v6  ;;  %v5129_v6 = vld [vmem:[#allocation2 + $0x4cc] ss:$16 sps:$4 sm:$0xff]  }
  0xca   :  { %1525 = vmatpush1.bf16.msra.mxu0 %v5032_v7  ;;  %v5124_v7 = vld [vmem:[#allocation2 + $0x5c0] ss:$16 sps:$4 sm:$0xff]  }
  0xcb   :  { %1673 = vmatpush1.bf16.msra.mxu1 %v5035_v8  ;;  %1535 = vmatprep.subr.bf16.mxu0 %v5042_v9  ;;  %v5127_v8 = vld [vmem:[#allocation2 + $0x4c8] ss:$16 sps:$4 sm:$0xff]   ;;  %v5132_v9 = vld [vmem:[#allocation2 + $0x5e4] ss:$16 sps:$4 sm:$0xff]  }
  0xcc   :  { %1674 = vmatprep.subr.bf16.mxu1 %v5045_v10  ;;  %v5135_v10 = vld [vmem:[#allocation2 + $0x4ec] ss:$16 sps:$4 sm:$0xff]  }
  0xcd   :  { %1527 = vmatmul.mubr.bf16.vlgmr.msra.gmra.mrb[0].mxu0 %v5852_v11 }
  0xce   :  { %1536 = vmatpush1.bf16.msra.mxu0 %v5040_v12  ;;  %1567 = vmatprep.mubr.bf16.mxu0 %v5861_v17  ;;  %v5133_v12 = vld [vmem:[#allocation2 + $0x4e8] ss:$16 sps:$4 sm:$0xff]  }
  0xcf   :  { %1675 = vmatpush1.bf16.msra.mxu1 %v5043_v13  ;;  %1537 = vmatprep.subr.bf16.mxu0 %v5048_v14  ;;  %v5140_v13 = vld [vmem:[#allocation2 + $0x50c] ss:$16 sps:$4 sm:$0xff]   ;;  %v5186_v14 = vld [vmem:[#allocation5 + $0x40] sm:$0xff]  }
  0xd0   :  { %1676 = vmatprep.subr.bf16.mxu1 %v5051_v15  ;;  %v5138_v15 = vld [vmem:[#allocation2 + $0x508] ss:$16 sps:$4 sm:$0xff]  }
  0xd2   :  { %1538 = vmatpush1.bf16.msra.mxu0 %v5046_v18  ;;  %v4193_v18 = vcombine.low %v5857_v16, %v5857_v16  ;;  %v5147_v16 = vld [vmem:[#allocation2 + $0x568] ss:$16 sps:$4 sm:$0xff]  }
  0xd3   :  { %1677 = vmatpush1.bf16.msra.mxu1 %v5049_v19  ;;  %1539 = vmatprep.subr.bf16.mxu0 %v5054_v20  ;;  %v5143_v19 = vld [vmem:[#allocation2 + $0x52c] ss:$16 sps:$4 sm:$0xff]  }
  0xd4   :  { %1678 = vmatprep.subr.bf16.mxu1 %v5057_v21  ;;  %v5188_v20 = vld [vmem:[#allocation5 + $0x48] sm:$0xff]  }
  0xd5   :  { %v5141_v21 = vld [vmem:[#allocation2 + $0x528] ss:$16 sps:$4 sm:$0xff]  }
  0xd6   :  { %1540 = vmatpush1.bf16.msra.mxu0 %v5052_v22  ;;  %v5189_v22 = vld [vmem:[#allocation5 + $0x8] sm:$0xff]  }
  0xd7   :  { %1679 = vmatpush1.bf16.msra.mxu1 %v5055_v23  ;;  %1541 = vmatprep.subr.bf16.mxu0 %v5060_v24  ;;  %v5146_v23 = vld [vmem:[#allocation2 + $0x54c] ss:$16 sps:$4 sm:$0xff]   ;;  %v5190_v24 = vld [vmem:[#allocation5 + $0x50] sm:$0xff]  }
  0xd8   :  { %1680 = vmatprep.subr.bf16.mxu1 %v5063_v25  ;;  %v5144_v25 = vld [vmem:[#allocation2 + $0x548] ss:$16 sps:$4 sm:$0xff]  }
  0xda   :  { %1542 = vmatpush1.bf16.msra.mxu0 %v5058_v26  ;;  %v5191_v26 = vld [vmem:[#allocation5 + $0x10] sm:$0xff]  }
  0xdb   :  { %1681 = vmatpush1.bf16.msra.mxu1 %v5061_v27  ;;  %1543 = vmatprep.subr.bf16.mxu0 %v5066_v28  ;;  %v5149_v27 = vld [vmem:[#allocation2 + $0x56c] ss:$16 sps:$4 sm:$0xff]  }
  0xdc   :  { %1682 = vmatprep.subr.bf16.mxu1 %v5069_v29  ;;  %v5192_v28 = vld [vmem:[#allocation5 + $0x58] sm:$0xff]  }
  0xdd   :  { %v5193_v29 = vld [vmem:[#allocation5 + $0x18] sm:$0xff]  }
  0xde   :  { %1544 = vmatpush1.bf16.msra.mxu0 %v5064_v30  ;;  %v5152_v30 = vld [vmem:[#allocation2 + $0x58c] ss:$16 sps:$4 sm:$0xff]  }
  0xdf   :  { %1683 = vmatpush1.bf16.msra.mxu1 %v5067_v31  ;;  %1545 = vmatprep.subr.bf16.mxu0 %v5072_v32  ;;  %v5194_v31 = vld [vmem:[#allocation5 + $0x60] sm:$0xff]   ;;  %v5150_v32 = vld [vmem:[#allocation2 + $0x588] ss:$16 sps:$4 sm:$0xff]  }
  0xe0   :  { %1684 = vmatprep.subr.bf16.mxu1 %v5075_v33  ;;  %v5195_v33 = vld [vmem:[#allocation5 + $0x20] sm:$0xff]  }
  0xe2   :  { %1546 = vmatpush1.bf16.msra.mxu0 %v5070_v34  ;;  %v5155_v34 = vld [vmem:[#allocation2 + $0x5ac] ss:$16 sps:$4 sm:$0xff]  }
  0xe3   :  { %1685 = vmatpush1.bf16.msra.mxu1 %v5073_v35  ;;  %1547 = vmatprep.subr.bf16.mxu0 %v5078_v36  ;;  %v5196_v35 = vld [vmem:[#allocation5 + $0x68] sm:$0xff]  }
  0xe4   :  { %1686 = vmatprep.subr.bf16.mxu1 %v5081_v37  ;;  %v5153_v36 = vld [vmem:[#allocation2 + $0x5a8] ss:$16 sps:$4 sm:$0xff]  }
  0xe5   :  { %v5197_v37 = vld [vmem:[#allocation5 + $0x28] sm:$0xff]  }
  0xe6   :  { %1548 = vmatpush1.bf16.msra.mxu0 %v5076_v38  ;;  %v5158_v38 = vld [vmem:[#allocation2 + $0x5cc] ss:$16 sps:$4 sm:$0xff]  }
  0xe7   :  { %1687 = vmatpush1.bf16.msra.mxu1 %v5079_v39  ;;  %1549 = vmatprep.subr.bf16.mxu0 %v5084_v40  ;;  %v5156_v39 = vld [vmem:[#allocation2 + $0x5c8] ss:$16 sps:$4 sm:$0xff]   ;;  %v5161_v40 = vld [vmem:[#allocation2 + $0x5ec] ss:$16 sps:$4 sm:$0xff]  }
  0xe8   :  { %1688 = vmatprep.subr.bf16.mxu1 %v5087_v41  ;;  %v5159_v41 = vld [vmem:[#allocation2 + $0x5e8] ss:$16 sps:$4 sm:$0xff]  }
  0xea   :  { %1550 = vmatpush1.bf16.msra.mxu0 %v5082_v42  ;;  %v5164_v42 = vld [vmem:[#allocation2 + $0x60c] ss:$16 sps:$4 sm:$0xff]  }
  0xeb   :  { %1689 = vmatpush1.bf16.msra.mxu1 %v5085_v43  ;;  %1551 = vmatprep.subr.bf16.mxu0 %v5090_v44  ;;  %v5162_v43 = vld [vmem:[#allocation2 + $0x608] ss:$16 sps:$4 sm:$0xff]   ;;  %v5167_v44 = vld [vmem:[#allocation2 + $0x62c] ss:$16 sps:$4 sm:$0xff]  }
  0xec   :  { %1699 = vmatprep.subr.bf16.mxu1 %v5093_v45  ;;  %v5165_v45 = vld [vmem:[#allocation2 + $0x628] ss:$16 sps:$4 sm:$0xff]  }
  0xee   :  { %1691 = vmatmul.mubr.bf16.vlgmr.msra.gmra.mrb[4].mxu1 %v5852_v11  ;;  %1552 = vmatpush1.bf16.msra.mxu0 %v5088_v46  ;;  %v5130_v11 = vld [vmem:[#allocation2 + $0x5e0] ss:$16 sps:$4 sm:$0xff]   ;;  %v5170_v46 = vld [vmem:[#allocation2 + $0x64c] ss:$16 sps:$4 sm:$0xff]  }
  0xef   :  { %1700 = vmatpush1.bf16.msra.mxu1 %v5091_v47  ;;  %1553 = vmatprep.subr.bf16.mxu0 %v5096_v48  ;;  %v5168_v47 = vld [vmem:[#allocation2 + $0x648] ss:$16 sps:$4 sm:$0xff]   ;;  %v5173_v48 = vld [vmem:[#allocation2 + $0x66c] ss:$16 sps:$4 sm:$0xff]  }
  0xf0   :  { %1701 = vmatprep.subr.bf16.mxu1 %v5099_v49  ;;  %1731 = vmatprep.mubr.bf16.mxu1 %v5861_v17  ;;  %v5187_v17 = vld [vmem:[#allocation5] sm:$0xff]   ;;  %v5171_v49 = vld [vmem:[#allocation2 + $0x668] ss:$16 sps:$4 sm:$0xff]  }
  0xf2   :  { %1554 = vmatpush1.bf16.msra.mxu0 %v5094_v50  ;;  %v5176_v50 = vld [vmem:[#allocation2 + $0x68c] ss:$16 sps:$4 sm:$0xff]  }
  0xf3   :  { %1702 = vmatpush1.bf16.msra.mxu1 %v5097_v51  ;;  %1555 = vmatprep.subr.bf16.mxu0 %v5102_v52  ;;  %v5174_v51 = vld [vmem:[#allocation2 + $0x688] ss:$16 sps:$4 sm:$0xff]   ;;  %v5179_v52 = vld [vmem:[#allocation2 + $0x6ac] ss:$16 sps:$4 sm:$0xff]  }
  0xf4   :  { %1703 = vmatprep.subr.bf16.mxu1 %v5105_v53  ;;  %v5177_v53 = vld [vmem:[#allocation2 + $0x6a8] ss:$16 sps:$4 sm:$0xff]  }
  0xf6   :  { %1556 = vmatpush1.bf16.msra.mxu0 %v5100_v54  ;;  %v5182_v54 = vld [vmem:[#allocation2 + $0x6cc] ss:$16 sps:$4 sm:$0xff]  }
  0xf7   :  { %1704 = vmatpush1.bf16.msra.mxu1 %v5103_v55  ;;  %1557 = vmatprep.subr.bf16.mxu0 %v5108_v56  ;;  %v5180_v56 = vld [vmem:[#allocation2 + $0x6c8] ss:$16 sps:$4 sm:$0xff]  }
  0xf8   :  { %1705 = vmatprep.subr.bf16.mxu1 %v5111_v57 }
  0xfa   :  { %1558 = vmatpush1.bf16.msra.mxu0 %v5106_v58  ;;  %v5185_v58 = vld [vmem:[#allocation2 + $0x6ec] ss:$16 sps:$4 sm:$0xff]  }
  0xfb   :  { %1706 = vmatpush1.bf16.msra.mxu1 %v5109_v59  ;;  %1559 = vmatprep.subr.bf16.mxu0 %v5114_v60 }
  0xfc   :  { %1707 = vmatprep.subr.bf16.mxu1 %v5117_v61  ;;  %v5183_v61 = vld [vmem:[#allocation2 + $0x6e8] ss:$16 sps:$4 sm:$0xff]  }
  0xfe   :  { %1560 = vmatpush1.bf16.msra.mxu0 %v5112_v62  ;;  %v5586_v62 = vld [vmem:[%s5926_s0 + $0x18] ss:$0 sps:$4 sm:$0xff]   ;;  %s5740_s0 = smov [#allocation11]  }
  0xff   :  { %1708 = vmatpush1.bf16.msra.mxu1 %v5115_v63  ;;  %1561 = vmatprep.subr.bf16.mxu0 %v5120_v1  ;;  %v5198_v63 = vld [vmem:[#allocation5 + $0x70] sm:$0xff]   ;;  %s4174_s8 = sshll.u32 %s5740_s0, 4  ;;  %s4175_s8 = int_to_ptr.vmem [resolvable:$true] %s4174_s8 }
 0x100   :  { %1709 = vmatprep.subr.bf16.mxu1 %v5123_v2  ;;  %v5199_v1 = vld [vmem:[#allocation5 + $0x30] sm:$0xff]   ;;  %v5200_v2 = vld [vmem:[#allocation5 + $0x78] sm:$0xff]   ;;  %s5675_s9 = scalar_lea.vmem %s4175_s8, 128  ;;  %p5680_p5 = scmp.lt.s32.totalorder %s4175_s8, %s4175_s8 }
 0x101   :  { %p5676_p4 = scmp.ne.s32.totalorder %s4175_s8, %s5675_s9  ;;  %p5681_p6 = scmp.lt.s32.totalorder %s5675_s9, %s5675_s9 }
 0x102   :  { %1562 = vmatpush1.bf16.msra.mxu0 %v5118_v3  ;;  %v5201_v3 = vld [vmem:[#allocation5 + $0x38] sm:$0xff]  }
 0x103   :  { %1710 = vmatpush1.bf16.msra.mxu1 %v5121_v4  ;;  %1563 = vmatprep.subr.bf16.mxu0 %v5126_v5  ;;  %v5202_v4 = vld [vmem:[#allocation5 + $0xc0] sm:$0xff]   ;;  %p5682_p7 = por %p5681_p6, %p5680_p5 }
 0x104   :  { %1711 = vmatprep.subr.bf16.mxu1 %v5129_v6  ;;  %v5203_v5 = vld [vmem:[#allocation5 + $0x80] sm:$0xff]   ;;  %v5204_v6 = vld [vmem:[#allocation5 + $0xc8] sm:$0xff]  }
 0x105   :  { %p5683_p8 = pnand %p5682_p7, %p5676_p4 }
 0x106   :  { %1564 = vmatpush1.bf16.msra.mxu0 %v5124_v7  ;;  %v5205_v7 = vld [vmem:[#allocation5 + $0x88] sm:$0xff]  }
 0x107   :  { %1712 = vmatpush1.bf16.msra.mxu1 %v5127_v8  ;;  %1565 = vmatprep.subr.bf16.mxu0 %v5132_v9  ;;  %v5206_v8 = vld [vmem:[#allocation5 + $0xd0] sm:$0xff]  }
 0x108   :  { %1713 = vmatprep.subr.bf16.mxu1 %v5135_v10  ;;  %v5207_v9 = vld [vmem:[#allocation5 + $0x90] sm:$0xff]   ;;  %v5208_v10 = vld [vmem:[#allocation5 + $0xd8] sm:$0xff]  }
 0x10a   :  { %1566 = vmatpush1.bf16.msra.mxu0 %v5130_v11  ;;  %v5209_v11 = vld [vmem:[#allocation5 + $0x98] sm:$0xff]  }
 0x10b   :  { %1714 = vmatpush1.bf16.msra.mxu1 %v5133_v12  ;;  %4708 = vmatprep.subr.bf16.mxu0 %v5186_v14  ;;  %v5210_v12 = vld [vmem:[#allocation5 + $0xe0] sm:$0xff]   ;;  %v5212_v14 = vld [vmem:[#allocation5 + $0xe8] sm:$0xff]  }
 0x10c   :  { %1715 = vmatprep.subr.bf16.mxu1 %v5140_v13  ;;  %v5211_v13 = vld [vmem:[#allocation5 + $0xa0] sm:$0xff]  }
 0x10d   :  { %1568 = vmatmul.mubr.bf16.vlgmr.msra.gmra.mrb[0].mxu0 %v4193_v18 }
 0x10e   :  { %4709 = vmatpush3.bf16.msra.mxu0 %v5187_v17  ;;  %v5214_v17 = vld [vmem:[#allocation5 + $0xf0] sm:$0xff]  }
 0x10f   :  { %1716 = vmatpush1.bf16.msra.mxu1 %v5138_v15  ;;  %4710 = vmatprep.subr.bf16.mxu0 %v5188_v20  ;;  %v5213_v15 = vld [vmem:[#allocation5 + $0xa8] sm:$0xff]   ;;  %v5217_v20 = vld [vmem:[#allocation5 + $0xb8] sm:$0xff]  }
 0x110   :  { %1717 = vmatprep.subr.bf16.mxu1 %v5143_v19  ;;  %v5216_v19 = vld [vmem:[#allocation5 + $0xf8] sm:$0xff]  }
 0x112   :  { %4711 = vmatpush3.bf16.msra.mxu0 %v5189_v22 }
 0x113   :  { %1718 = vmatpush1.bf16.msra.mxu1 %v5141_v21  ;;  %4712 = vmatprep.subr.bf16.mxu0 %v5190_v24 }
 0x114   :  { %1719 = vmatprep.subr.bf16.mxu1 %v5146_v23 }
 0x116   :  { %4713 = vmatpush3.bf16.msra.mxu0 %v5191_v26 }
 0x117   :  { %1720 = vmatpush1.bf16.msra.mxu1 %v5144_v25  ;;  %4714 = vmatprep.subr.bf16.mxu0 %v5192_v28 }
 0x118   :  { %1721 = vmatprep.subr.bf16.mxu1 %v5149_v27 }
 0x11a   :  { %4715 = vmatpush3.bf16.msra.mxu0 %v5193_v29 }
 0x11b   :  { %1722 = vmatpush1.bf16.msra.mxu1 %v5147_v16  ;;  %4716 = vmatprep.subr.bf16.mxu0 %v5194_v31 }
 0x11c   :  { %1723 = vmatprep.subr.bf16.mxu1 %v5152_v30 }
 0x11e   :  { %4717 = vmatpush3.bf16.msra.mxu0 %v5195_v33 }
 0x11f   :  { %1724 = vmatpush1.bf16.msra.mxu1 %v5150_v32  ;;  %4718 = vmatprep.subr.bf16.mxu0 %v5196_v35 }
 0x120   :  { %1725 = vmatprep.subr.bf16.mxu1 %v5155_v34 }
 0x122   :  { %4719 = vmatpush3.bf16.msra.mxu0 %v5197_v37 }
 0x123   :  { %1726 = vmatpush1.bf16.msra.mxu1 %v5153_v36  ;;  %4720 = vmatprep.subr.bf16.mxu0 %v5198_v63  ;;  %v5254_v63 = vld [vmem:[#allocation7 + $0xc0] ss:$16 sps:$4 sm:$0xff]  }
 0x124   :  { %1727 = vmatprep.subr.bf16.mxu1 %v5158_v38  ;;  %v5218_v38 = vld [vmem:[#allocation7] ss:$16 sps:$4 sm:$0xff]  }
 0x126   :  { %4721 = vmatpush3.bf16.msra.mxu0 %v5199_v1  ;;  %v5257_v1 = vld [vmem:[#allocation7 + $0xc8] ss:$16 sps:$4 sm:$0xff]  }
 0x127   :  { %1728 = vmatpush1.bf16.msra.mxu1 %v5156_v39  ;;  %4722 = vmatprep.subr.bf16.mxu0 %v5200_v2  ;;  %v5220_v39 = vld [vmem:[#allocation7 + $0x4] ss:$16 sps:$4 sm:$0xff]  }
 0x128   :  { %1729 = vmatprep.subr.bf16.mxu1 %v5161_v40  ;;  %v5221_v40 = vld [vmem:[#allocation7 + $0x8] ss:$16 sps:$4 sm:$0xff]   ;;  %v5262_v2 = vld [vmem:[#allocation7 + $0xe4] ss:$16 sps:$4 sm:$0xff]  }
 0x12a   :  { %4723 = vmatpush3.bf16.msra.mxu0 %v5201_v3  ;;  %v5265_v3 = vld [vmem:[#allocation7 + $0xec] ss:$16 sps:$4 sm:$0xff]  }
 0x12b   :  { %1730 = vmatpush1.bf16.msra.mxu1 %v5159_v41  ;;  %v5223_v41 = vld [vmem:[#allocation7 + $0xc] ss:$16 sps:$4 sm:$0xff]   ;;  %2320 = vmatprep.subr.bf16.mxu0 %v5220_v39 }
 0x12c   :  { %1740 = vmatprep.subr.bf16.mxu1 %v5164_v42  ;;  %v5226_v42 = vld [vmem:[#allocation7 + $0x24] ss:$16 sps:$4 sm:$0xff]   ;;  %v5298_v39 = vld [vmem:[#allocation8 + $0x11c] ss:$28 sps:$4 sm:$0xff]  }
 0x12e   :  { %1732 = vmatmul.mubr.bf16.vlgmr.msra.gmra.mrb[4].mxu1 %v4193_v18  ;;  %v5215_v18 = vld [vmem:[#allocation5 + $0xb0] sm:$0xff]  }
 0x12f   :  { %1741 = vmatpush1.bf16.msra.mxu1 %v5162_v43  ;;  %1772 = vmatprep.mubr.bf16.mxu1 %v5739_v0  ;;  %v5229_v43 = vld [vmem:[#allocation7 + $0x2c] ss:$16 sps:$4 sm:$0xff]  }
 0x130   :  { %1742 = vmatprep.subr.bf16.mxu1 %v5167_v44  ;;  %v5224_v44 = vld [vmem:[#allocation7 + $0x20] ss:$16 sps:$4 sm:$0xff]  }
 0x133   :  { %1743 = vmatpush1.bf16.msra.mxu1 %v5165_v45  ;;  %v5227_v45 = vld [vmem:[#allocation7 + $0x28] ss:$16 sps:$4 sm:$0xff]  }
 0x134   :  { %1744 = vmatprep.subr.bf16.mxu1 %v5170_v46  ;;  %v5232_v46 = vld [vmem:[#allocation7 + $0x44] ss:$16 sps:$4 sm:$0xff]  }
 0x137   :  { %1745 = vmatpush1.bf16.msra.mxu1 %v5168_v47  ;;  %v5235_v47 = vld [vmem:[#allocation7 + $0x4c] ss:$16 sps:$4 sm:$0xff]  }
 0x138   :  { %1746 = vmatprep.subr.bf16.mxu1 %v5173_v48  ;;  %v5230_v48 = vld [vmem:[#allocation7 + $0x40] ss:$16 sps:$4 sm:$0xff]  }
 0x13b   :  { %1747 = vmatpush1.bf16.msra.mxu1 %v5171_v49  ;;  %v5238_v49 = vld [vmem:[#allocation7 + $0x64] ss:$16 sps:$4 sm:$0xff]  }
 0x13c   :  { %1748 = vmatprep.subr.bf16.mxu1 %v5176_v50  ;;  %v5241_v50 = vld [vmem:[#allocation7 + $0x6c] ss:$16 sps:$4 sm:$0xff]  }
 0x13f   :  { %1749 = vmatpush1.bf16.msra.mxu1 %v5174_v51  ;;  %v5236_v51 = vld [vmem:[#allocation7 + $0x60] ss:$16 sps:$4 sm:$0xff]  }
 0x140   :  { %1750 = vmatprep.subr.bf16.mxu1 %v5179_v52  ;;  %v5239_v52 = vld [vmem:[#allocation7 + $0x68] ss:$16 sps:$4 sm:$0xff]  }
 0x141   :  { %v1610_v55 = vpop.f32.mrb[0].mxu1 }
 0x142   :  { %v1612_v57 = vpop.f32.mrb[1].mxu1 }
 0x143   :  { %v1614_v59 = vpop.f32.mrb[2].mxu1  ;;  %1751 = vmatpush1.bf16.msra.mxu1 %v5177_v53  ;;  %v5244_v53 = vld [vmem:[#allocation7 + $0x84] ss:$16 sps:$4 sm:$0xff]  }
 0x144   :  { %v1615_v60 = vpop.f32.mrb[3].mxu1  ;;  %1752 = vmatprep.subr.bf16.mxu1 %v5182_v54  ;;  %v5247_v54 = vld [vmem:[#allocation7 + $0x8c] ss:$16 sps:$4 sm:$0xff]   ;;  %v5248_v59 = vld [vmem:[#allocation7 + $0xa0] ss:$16 sps:$4 sm:$0xff]  }
 0x145   :  { %v5251_v60 = vld [vmem:[#allocation7 + $0xa8] ss:$16 sps:$4 sm:$0xff]  }
 0x147   :  { %1753 = vmatpush1.bf16.msra.mxu1 %v5180_v56  ;;  %v5245_v56 = vld [vmem:[#allocation7 + $0x88] ss:$16 sps:$4 sm:$0xff]  }
 0x148   :  { %1754 = vmatprep.subr.bf16.mxu1 %v5185_v58  ;;  %v5253_v58 = vld [vmem:[#allocation7 + $0xac] ss:$16 sps:$4 sm:$0xff]  }
 0x14b   :  { %1755 = vmatpush1.bf16.msra.mxu1 %v5183_v61  ;;  %v5256_v61 = vld [vmem:[#allocation7 + $0xc4] ss:$16 sps:$4 sm:$0xff]  }
 0x14c   :  { %4730 = vmatprep.subr.bf16.mxu1 %v5202_v4  ;;  %v5260_v4 = vld [vmem:[#allocation7 + $0xe0] ss:$16 sps:$4 sm:$0xff]  }
 0x14e   :  { %1773 = vmatmul.mubr.bf16.vlgmr.msra.gmra.mrb[4].mxu1 %v5586_v62  ;;  %v5259_v62 = vld [vmem:[#allocation7 + $0xcc] ss:$16 sps:$4 sm:$0xff]  }
 0x14f   :  { %4731 = vmatpush3.bf16.msra.mxu1 %v5203_v5  ;;  %v5263_v5 = vld [vmem:[#allocation7 + $0xe8] ss:$16 sps:$4 sm:$0xff]  }
 0x150   :  { %4732 = vmatprep.subr.bf16.mxu1 %v5204_v6  ;;  %v5268_v6 = vld [vmem:[#allocation8 + $0x4] ss:$28 sps:$4 sm:$0xff]  }
 0x153   :  { %4733 = vmatpush3.bf16.msra.mxu1 %v5205_v7  ;;  %v5271_v7 = vld [vmem:[#allocation8 + $0xc] ss:$28 sps:$4 sm:$0xff]  }
 0x154   :  { %4734 = vmatprep.subr.bf16.mxu1 %v5206_v8 }
 0x157   :  { %4735 = vmatpush3.bf16.msra.mxu1 %v5207_v9 }
 0x158   :  { %4736 = vmatprep.subr.bf16.mxu1 %v5208_v10 }
 0x15b   :  { %4737 = vmatpush3.bf16.msra.mxu1 %v5209_v11 }
 0x15c   :  { %4738 = vmatprep.subr.bf16.mxu1 %v5210_v12 }
 0x15f   :  { %4739 = vmatpush3.bf16.msra.mxu1 %v5211_v13 }
 0x160   :  { %4740 = vmatprep.subr.bf16.mxu1 %v5212_v14 }
 0x163   :  { %4741 = vmatpush3.bf16.msra.mxu1 %v5213_v15 }
 0x164   :  { %4742 = vmatprep.subr.bf16.mxu1 %v5214_v17 }
 0x167   :  { %4743 = vmatpush3.bf16.msra.mxu1 %v5215_v18 }
 0x168   :  { %4744 = vmatprep.subr.bf16.mxu1 %v5216_v19 }
 0x16b   :  { %4745 = vmatpush3.bf16.msra.mxu1 %v5217_v20 }
 0x16c   :  { %2361 = vmatprep.subr.bf16.mxu1 %v5223_v41  ;;  %v5296_v41 = vld [vmem:[#allocation8 + $0x118] ss:$28 sps:$4 sm:$0xff]  }
 0x1e0   :  { %v1569_v21 = vpop.f32.mrb[0].mxu0 }
 0x1e1   :  { %v4796_v22 = vadd.f32 %v1610_v55, %v1569_v21  ;;  %v1571_v23 = vpop.f32.mrb[1].mxu0  ;;  %v5242_v55 = vld [vmem:[#allocation7 + $0x80] ss:$16 sps:$4 sm:$0xff]  }
 0x1e2   :  { %v4797_v24 = vadd.f32 %v1612_v57, %v1571_v23  ;;  %v1573_v25 = vpop.f32.mrb[2].mxu0  ;;  %v5250_v57 = vld [vmem:[#allocation7 + $0xa4] ss:$16 sps:$4 sm:$0xff]   ;;  %v5266_v21 = vld [vmem:[#allocation8] ss:$28 sps:$4 sm:$0xff]  }
 0x1e3   :  { %v1781_v26 = vmax.f32 %v4796_v22, 0.0  ;;  %v1574_v27 = vpop.f32.mrb[3].mxu0  ;;  %v5269_v22 = vld [vmem:[#allocation8 + $0x8] ss:$28 sps:$4 sm:$0xff]  }
 0x1e4   :  { %v1782_v28 = vmax.f32 %v4797_v24, 0.0  ;;  %v5274_v24 = vld [vmem:[#allocation8 + $0x3c] ss:$28 sps:$4 sm:$0xff]   ;;  %v5277_v25 = vld [vmem:[#allocation8 + $0x44] ss:$28 sps:$4 sm:$0xff]  }
 0x1e5   :  { %v1785_v29 = vpack.c.bf16 %v1781_v26, %v1781_v26  ;;  %v5272_v26 = vld [vmem:[#allocation8 + $0x38] ss:$28 sps:$4 sm:$0xff]   ;;  %v5275_v27 = vld [vmem:[#allocation8 + $0x40] ss:$28 sps:$4 sm:$0xff]  }
 0x1e6   :  { %v1786_v16 = vpack.c.bf16 %v1782_v28, %v1782_v28  ;;  %v5280_v28 = vld [vmem:[#allocation8 + $0x74] ss:$28 sps:$4 sm:$0xff]  }
 0x1e8   :  { %2077 = vmatprep.mubr.bf16.mxu0 %v1786_v16  ;;  %v5283_v16 = vld [vmem:[#allocation8 + $0x7c] ss:$28 sps:$4 sm:$0xff]  }
 0x1e9   :  { %2078 = vmatmul.mubr.bf16.vlgmr.msra.gmra.mrb[4].mxu0 %v1785_v29  ;;  %v5278_v29 = vld [vmem:[#allocation8 + $0x70] ss:$28 sps:$4 sm:$0xff]  }
 0x1ea   :  { %2352 = vmatprep.mubr.bf16.mxu0 %v5739_v0  ;;  %2321 = vmatpush1.bf16.msra.mxu0 %v5218_v38  ;;  %v5293_v38 = vld [vmem:[#allocation8 + $0xe8] ss:$28 sps:$4 sm:$0xff]  }
 0x1eb   :  { %2322 = vmatprep.subr.bf16.mxu0 %v5226_v42  ;;  %v5299_v42 = vld [vmem:[#allocation8 + $0x120] ss:$28 sps:$4 sm:$0xff]  }
 0x1ee   :  { %2323 = vmatpush1.bf16.msra.mxu0 %v5224_v44  ;;  %v5307_v44 = vld [vmem:[#allocation8 + $0x15c] ss:$28 sps:$4 sm:$0xff]  }
 0x1ef   :  { %2324 = vmatprep.subr.bf16.mxu0 %v5232_v46  ;;  %v5305_v46 = vld [vmem:[#allocation8 + $0x158] ss:$28 sps:$4 sm:$0xff]  }
 0x1f2   :  { %2325 = vmatpush1.bf16.msra.mxu0 %v5230_v48  ;;  %v5313_v48 = vld [vmem:[#allocation8 + $0x194] ss:$28 sps:$4 sm:$0xff]  }
 0x1f3   :  { %2326 = vmatprep.subr.bf16.mxu0 %v5238_v49  ;;  %v5311_v49 = vld [vmem:[#allocation8 + $0x190] ss:$28 sps:$4 sm:$0xff]  }
 0x1f6   :  { %2327 = vmatpush1.bf16.msra.mxu0 %v5236_v51  ;;  %v5319_v51 = vld [vmem:[#allocation8 + $0x1cc] ss:$28 sps:$4 sm:$0xff]  }
 0x1f7   :  { %2328 = vmatprep.subr.bf16.mxu0 %v5244_v53  ;;  %v5317_v53 = vld [vmem:[#allocation8 + $0x1c8] ss:$28 sps:$4 sm:$0xff]  }
 0x1fa   :  { %2329 = vmatpush1.bf16.msra.mxu0 %v5242_v55  ;;  %v5325_v55 = vld [vmem:[#allocation8 + $0x204] ss:$28 sps:$4 sm:$0xff]  }
 0x1fb   :  { %2330 = vmatprep.subr.bf16.mxu0 %v5250_v57  ;;  %v5323_v57 = vld [vmem:[#allocation8 + $0x200] ss:$28 sps:$4 sm:$0xff]  }
 0x1fe   :  { %2331 = vmatpush1.bf16.msra.mxu0 %v5248_v59  ;;  %v5331_v59 = vld [vmem:[#allocation8 + $0x23c] ss:$28 sps:$4 sm:$0xff]  }
 0x1ff   :  { %2332 = vmatprep.subr.bf16.mxu0 %v5256_v61  ;;  %v5329_v61 = vld [vmem:[#allocation8 + $0x238] ss:$28 sps:$4 sm:$0xff]  }
 0x202   :  { %2333 = vmatpush1.bf16.msra.mxu0 %v5254_v63  ;;  %v5337_v63 = vld [vmem:[#allocation8 + $0x274] ss:$28 sps:$4 sm:$0xff]  }
 0x203   :  { %2334 = vmatprep.subr.bf16.mxu0 %v5262_v2  ;;  %v5335_v2 = vld [vmem:[#allocation8 + $0x270] ss:$28 sps:$4 sm:$0xff]  }
 0x206   :  { %2335 = vmatpush1.bf16.msra.mxu0 %v5260_v4  ;;  %v5343_v4 = vld [vmem:[#allocation8 + $0x2ac] ss:$28 sps:$4 sm:$0xff]  }
 0x207   :  { %3818 = vmatprep.subr.bf16.mxu0 %v5268_v6  ;;  %v5341_v6 = vld [vmem:[#allocation8 + $0x2a8] ss:$28 sps:$4 sm:$0xff]  }
 0x221   :  { %v1774_v30 = vpop.f32.mrb[4].mxu1 }
 0x222   :  { %v1783_v31 = vmax.f32 %v1774_v30, 0.0  ;;  %v1776_v32 = vpop.f32.mrb[5].mxu1  ;;  %v5281_v30 = vld [vmem:[#allocation8 + $0x78] ss:$28 sps:$4 sm:$0xff]  }
 0x223   :  { %v1784_v33 = vmax.f32 %v1776_v32, 0.0  ;;  %v1778_v34 = vpop.f32.mrb[6].mxu1  ;;  %v5289_v32 = vld [vmem:[#allocation8 + $0xb4] ss:$28 sps:$4 sm:$0xff]  }
 0x224   :  { %v1779_v35 = vpop.f32.mrb[7].mxu1  ;;  %v1787_v37 = vpack.c.bf16 %v1783_v31, %v1783_v31  ;;  %v5286_v31 = vld [vmem:[#allocation8 + $0xac] ss:$28 sps:$4 sm:$0xff]  }
 0x225   :  { %v1788_v36 = vpack.c.bf16 %v1784_v33, %v1784_v33  ;;  %v5284_v33 = vld [vmem:[#allocation8 + $0xa8] ss:$28 sps:$4 sm:$0xff]   ;;  %v5287_v34 = vld [vmem:[#allocation8 + $0xb0] ss:$28 sps:$4 sm:$0xff]  }
 0x226   :  { %v5292_v35 = vld [vmem:[#allocation8 + $0xe4] ss:$28 sps:$4 sm:$0xff]  }
 0x227   :  { %2117 = vmatprep.mubr.bf16.mxu1 %v1788_v36  ;;  %v5295_v36 = vld [vmem:[#allocation8 + $0xec] ss:$28 sps:$4 sm:$0xff]  }
 0x228   :  { %2118 = vmatmul.mubr.bf16.vlgmr.msra.gmra.mrb[8].mxu1 %v1787_v37  ;;  %v5290_v37 = vld [vmem:[#allocation8 + $0xe0] ss:$28 sps:$4 sm:$0xff]  }
 0x229   :  { %2393 = vmatprep.mubr.bf16.mxu1 %v5739_v0  ;;  %2362 = vmatpush1.bf16.msra.mxu1 %v5221_v40  ;;  %v5233_v0 = vld [vmem:[#allocation7 + $0x48] ss:$16 sps:$4 sm:$0xff]   ;;  %v5301_v40 = vld [vmem:[#allocation8 + $0x124] ss:$28 sps:$4 sm:$0xff]  }
 0x22a   :  { %2363 = vmatprep.subr.bf16.mxu1 %v5229_v43  ;;  %v5304_v43 = vld [vmem:[#allocation8 + $0x154] ss:$28 sps:$4 sm:$0xff]  }
 0x22d   :  { %2364 = vmatpush1.bf16.msra.mxu1 %v5227_v45  ;;  %v5302_v45 = vld [vmem:[#allocation8 + $0x150] ss:$28 sps:$4 sm:$0xff]  }
 0x22e   :  { %2365 = vmatprep.subr.bf16.mxu1 %v5235_v47  ;;  %v5310_v47 = vld [vmem:[#allocation8 + $0x18c] ss:$28 sps:$4 sm:$0xff]  }
 0x231   :  { %2366 = vmatpush1.bf16.msra.mxu1 %v5233_v0  ;;  %v5308_v0 = vld [vmem:[#allocation8 + $0x188] ss:$28 sps:$4 sm:$0xff]  }
 0x232   :  { %2367 = vmatprep.subr.bf16.mxu1 %v5241_v50  ;;  %v5316_v50 = vld [vmem:[#allocation8 + $0x1c4] ss:$28 sps:$4 sm:$0xff]  }
 0x235   :  { %2368 = vmatpush1.bf16.msra.mxu1 %v5239_v52  ;;  %v5314_v52 = vld [vmem:[#allocation8 + $0x1c0] ss:$28 sps:$4 sm:$0xff]  }
 0x236   :  { %2369 = vmatprep.subr.bf16.mxu1 %v5247_v54  ;;  %v5322_v54 = vld [vmem:[#allocation8 + $0x1fc] ss:$28 sps:$4 sm:$0xff]  }
 0x239   :  { %2370 = vmatpush1.bf16.msra.mxu1 %v5245_v56  ;;  %v5320_v56 = vld [vmem:[#allocation8 + $0x1f8] ss:$28 sps:$4 sm:$0xff]  }
 0x23a   :  { %2371 = vmatprep.subr.bf16.mxu1 %v5253_v58  ;;  %v5328_v58 = vld [vmem:[#allocation8 + $0x234] ss:$28 sps:$4 sm:$0xff]  }
 0x23d   :  { %2372 = vmatpush1.bf16.msra.mxu1 %v5251_v60  ;;  %v5326_v60 = vld [vmem:[#allocation8 + $0x230] ss:$28 sps:$4 sm:$0xff]  }
 0x23e   :  { %2373 = vmatprep.subr.bf16.mxu1 %v5259_v62  ;;  %v5334_v62 = vld [vmem:[#allocation8 + $0x26c] ss:$28 sps:$4 sm:$0xff]  }
 0x241   :  { %2374 = vmatpush1.bf16.msra.mxu1 %v5257_v1  ;;  %v5332_v1 = vld [vmem:[#allocation8 + $0x268] ss:$28 sps:$4 sm:$0xff]  }
 0x242   :  { %2375 = vmatprep.subr.bf16.mxu1 %v5265_v3  ;;  %v5340_v3 = vld [vmem:[#allocation8 + $0x2a4] ss:$28 sps:$4 sm:$0xff]  }
 0x245   :  { %2376 = vmatpush1.bf16.msra.mxu1 %v5263_v5  ;;  %v5338_v5 = vld [vmem:[#allocation8 + $0x2a0] ss:$28 sps:$4 sm:$0xff]  }
 0x246   :  { %3900 = vmatprep.subr.bf16.mxu1 %v5271_v7  ;;  %v5346_v7 = vld [vmem:[#allocation8 + $0x2dc] ss:$28 sps:$4 sm:$0xff]  }
 0x2bc   :  { %v4724_v8 = vpop.f32.mrb[4].mxu0 }
 0x2bd   :  { %v4725_v9 = vpop.f32.mrb[5].mxu0 }
 0x2be   :  { %v4726_v10 = vadd.f32 %v4725_v9, %v4724_v8  ;;  %v4727_v11 = vpop.f32.mrb[6].mxu0  ;;  %v5349_v8 = vld [vmem:[#allocation8 + $0x2e4] ss:$28 sps:$4 sm:$0xff]   ;;  %v5344_v9 = vld [vmem:[#allocation8 + $0x2d8] ss:$28 sps:$4 sm:$0xff]  }
 0x2bf   :  { %v4728_v12 = vpop.f32.mrb[7].mxu0  ;;  %v5352_v11 = vld [vmem:[#allocation8 + $0x314] ss:$28 sps:$4 sm:$0xff]  }
 0x2c0   :  { %v5355_v12 = vld [vmem:[#allocation8 + $0x31c] ss:$28 sps:$4 sm:$0xff]  }
 0x2fb   :  { %v4746_v13 = vpop.f32.mrb[8].mxu1 }
 0x2fc   :  { %v4747_v14 = vpop.f32.mrb[9].mxu1 }
 0x2fd   :  { %v4748_v15 = vadd.f32 %v4747_v14, %v4746_v13  ;;  %v4749_v17 = vpop.f32.mrb[10].mxu1  ;;  %v5350_v13 = vld [vmem:[#allocation8 + $0x310] ss:$28 sps:$4 sm:$0xff]   ;;  %v5353_v14 = vld [vmem:[#allocation8 + $0x318] ss:$28 sps:$4 sm:$0xff]  }
 0x2fe   :  { %v4750_v18 = vpop.f32.mrb[11].mxu1  ;;  %v5361_v17 = vld [vmem:[#allocation8 + $0x354] ss:$28 sps:$4 sm:$0xff]  }
 0x2ff   :  { %v2120_v19 = vadd.f32 %v4748_v15, %v4726_v10  ;;  %v5347_v10 = vld [vmem:[#allocation8 + $0x2e0] ss:$28 sps:$4 sm:$0xff]   ;;  %v5358_v15 = vld [vmem:[#allocation8 + $0x34c] ss:$28 sps:$4 sm:$0xff]  }
 0x300   :  { %v5356_v18 = vld [vmem:[#allocation8 + $0x348] ss:$28 sps:$4 sm:$0xff]  }
 0x301   :  { %v2125_v20 = vmax.f32 %v2120_v19, 0.0  ;;  %v5359_v19 = vld [vmem:[#allocation8 + $0x350] ss:$28 sps:$4 sm:$0xff]  }
 0x303   :  { %v2127_v23 = vpack.c.bf16 %v2125_v20, %v2125_v20  ;;  %2126 = vst [vmem:[#allocation11] sm:$0xff] %v2125_v20  ;;  %v5364_v20 = vld [vmem:[#allocation8 + $0x384] ss:$28 sps:$4 sm:$0xff]  }
 0x305   :  { %2353 = vmatmul.mubr.bf16.vlgmr.msra.gmra.mrb[8].mxu0 %v2127_v23  ;;  %2394 = vmatmul.mubr.bf16.vlgmr.msra.gmra.mrb[12].mxu1 %v2127_v23 }
 0x306   :  { %3819 = vmatpush1.bf16.msra.mxu0 %v5266_v21  ;;  %3901 = vmatpush1.bf16.msra.mxu1 %v5269_v22  ;;  %v5367_v21 = vld [vmem:[#allocation8 + $0x38c] ss:$28 sps:$4 sm:$0xff]  }
 0x307   :  { %3820 = vmatprep.subr.bf16.mxu0 %v5274_v24  ;;  %3902 = vmatprep.subr.bf16.mxu1 %v5277_v25 }
 0x30a   :  { %3821 = vmatpush1.bf16.msra.mxu0 %v5272_v26  ;;  %3903 = vmatpush1.bf16.msra.mxu1 %v5275_v27 }
 0x30b   :  { %3822 = vmatprep.subr.bf16.mxu0 %v5280_v28  ;;  %3904 = vmatprep.subr.bf16.mxu1 %v5283_v16 }
 0x30e   :  { %3823 = vmatpush1.bf16.msra.mxu0 %v5278_v29  ;;  %3905 = vmatpush1.bf16.msra.mxu1 %v5281_v30 }
 0x30f   :  { %3824 = vmatprep.subr.bf16.mxu0 %v5286_v31  ;;  %3906 = vmatprep.subr.bf16.mxu1 %v5289_v32 }
 0x312   :  { %3825 = vmatpush1.bf16.msra.mxu0 %v5284_v33  ;;  %3907 = vmatpush1.bf16.msra.mxu1 %v5287_v34  ;;  %v5362_v33 = vld [vmem:[#allocation8 + $0x380] ss:$28 sps:$4 sm:$0xff]   ;;  %v5365_v34 = vld [vmem:[#allocation8 + $0x388] ss:$28 sps:$4 sm:$0xff]  }
 0x313   :  { %3826 = vmatprep.subr.bf16.mxu0 %v5292_v35  ;;  %3908 = vmatprep.subr.bf16.mxu1 %v5295_v36  ;;  %v5370_v36 = vld [vmem:[#allocation8 + $0x3bc] ss:$28 sps:$4 sm:$0xff]  }
 0x316   :  { %3827 = vmatpush1.bf16.msra.mxu0 %v5290_v37  ;;  %3909 = vmatpush1.bf16.msra.mxu1 %v5293_v38  ;;  %v5373_v37 = vld [vmem:[#allocation8 + $0x3c4] ss:$28 sps:$4 sm:$0xff]  }
 0x317   :  { %3828 = vmatprep.subr.bf16.mxu0 %v5298_v39  ;;  %3910 = vmatprep.subr.bf16.mxu1 %v5301_v40  ;;  %v5368_v39 = vld [vmem:[#allocation8 + $0x3b8] ss:$28 sps:$4 sm:$0xff]   ;;  %v5371_v40 = vld [vmem:[#allocation8 + $0x3c0] ss:$28 sps:$4 sm:$0xff]  }
 0x31a   :  { %3829 = vmatpush1.bf16.msra.mxu0 %v5296_v41  ;;  %3911 = vmatpush1.bf16.msra.mxu1 %v5299_v42  ;;  %v5376_v41 = vld [vmem:[#allocation8 + $0x3f4] ss:$28 sps:$4 sm:$0xff]   ;;  %v5379_v42 = vld [vmem:[#allocation8 + $0x3fc] ss:$28 sps:$4 sm:$0xff]  }
 0x31b   :  { %3830 = vmatprep.subr.bf16.mxu0 %v5304_v43  ;;  %3912 = vmatprep.subr.bf16.mxu1 %v5307_v44  ;;  %v5374_v43 = vld [vmem:[#allocation8 + $0x3f0] ss:$28 sps:$4 sm:$0xff]   ;;  %v5377_v44 = vld [vmem:[#allocation8 + $0x3f8] ss:$28 sps:$4 sm:$0xff]  }
 0x31e   :  { %3831 = vmatpush1.bf16.msra.mxu0 %v5302_v45  ;;  %3913 = vmatpush1.bf16.msra.mxu1 %v5305_v46  ;;  %v5382_v45 = vld [vmem:[#allocation8 + $0x42c] ss:$28 sps:$4 sm:$0xff]   ;;  %v5385_v46 = vld [vmem:[#allocation8 + $0x434] ss:$28 sps:$4 sm:$0xff]  }
 0x31f   :  { %3832 = vmatprep.subr.bf16.mxu0 %v5310_v47  ;;  %3914 = vmatprep.subr.bf16.mxu1 %v5313_v48  ;;  %v5380_v47 = vld [vmem:[#allocation8 + $0x428] ss:$28 sps:$4 sm:$0xff]   ;;  %v5383_v48 = vld [vmem:[#allocation8 + $0x430] ss:$28 sps:$4 sm:$0xff]  }
 0x322   :  { %3833 = vmatpush1.bf16.msra.mxu0 %v5308_v0  ;;  %3915 = vmatpush1.bf16.msra.mxu1 %v5311_v49  ;;  %v5388_v0 = vld [vmem:[#allocation8 + $0x464] ss:$28 sps:$4 sm:$0xff]   ;;  %v5391_v49 = vld [vmem:[#allocation8 + $0x46c] ss:$28 sps:$4 sm:$0xff]  }
 0x323   :  { %3834 = vmatprep.subr.bf16.mxu0 %v5316_v50  ;;  %3916 = vmatprep.subr.bf16.mxu1 %v5319_v51  ;;  %v5386_v50 = vld [vmem:[#allocation8 + $0x460] ss:$28 sps:$4 sm:$0xff]   ;;  %v5389_v51 = vld [vmem:[#allocation8 + $0x468] ss:$28 sps:$4 sm:$0xff]  }
 0x326   :  { %3835 = vmatpush1.bf16.msra.mxu0 %v5314_v52  ;;  %3917 = vmatpush1.bf16.msra.mxu1 %v5317_v53  ;;  %v5394_v52 = vld [vmem:[#allocation8 + $0x49c] ss:$28 sps:$4 sm:$0xff]   ;;  %v5397_v53 = vld [vmem:[#allocation8 + $0x4a4] ss:$28 sps:$4 sm:$0xff]  }
 0x327   :  { %3836 = vmatprep.subr.bf16.mxu0 %v5322_v54  ;;  %3918 = vmatprep.subr.bf16.mxu1 %v5325_v55  ;;  %v5392_v54 = vld [vmem:[#allocation8 + $0x498] ss:$28 sps:$4 sm:$0xff]   ;;  %v5395_v55 = vld [vmem:[#allocation8 + $0x4a0] ss:$28 sps:$4 sm:$0xff]  }
 0x32a   :  { %3837 = vmatpush1.bf16.msra.mxu0 %v5320_v56  ;;  %3919 = vmatpush1.bf16.msra.mxu1 %v5323_v57  ;;  %v5400_v56 = vld [vmem:[#allocation8 + $0x4d4] ss:$28 sps:$4 sm:$0xff]   ;;  %v5403_v57 = vld [vmem:[#allocation8 + $0x4dc] ss:$28 sps:$4 sm:$0xff]  }
 0x32b   :  { %3838 = vmatprep.subr.bf16.mxu0 %v5328_v58  ;;  %3920 = vmatprep.subr.bf16.mxu1 %v5331_v59  ;;  %v5398_v58 = vld [vmem:[#allocation8 + $0x4d0] ss:$28 sps:$4 sm:$0xff]   ;;  %v5401_v59 = vld [vmem:[#allocation8 + $0x4d8] ss:$28 sps:$4 sm:$0xff]  }
 0x32e   :  { %3839 = vmatpush1.bf16.msra.mxu0 %v5326_v60  ;;  %3921 = vmatpush1.bf16.msra.mxu1 %v5329_v61  ;;  %v5406_v60 = vld [vmem:[#allocation8 + $0x50c] ss:$28 sps:$4 sm:$0xff]   ;;  %v5409_v61 = vld [vmem:[#allocation8 + $0x514] ss:$28 sps:$4 sm:$0xff]  }
 0x32f   :  { %3840 = vmatprep.subr.bf16.mxu0 %v5334_v62  ;;  %3922 = vmatprep.subr.bf16.mxu1 %v5337_v63  ;;  %v5404_v62 = vld [vmem:[#allocation8 + $0x508] ss:$28 sps:$4 sm:$0xff]   ;;  %v5407_v63 = vld [vmem:[#allocation8 + $0x510] ss:$28 sps:$4 sm:$0xff]  }
 0x332   :  { %3841 = vmatpush1.bf16.msra.mxu0 %v5332_v1  ;;  %3923 = vmatpush1.bf16.msra.mxu1 %v5335_v2  ;;  %v5412_v1 = vld [vmem:[#allocation8 + $0x544] ss:$28 sps:$4 sm:$0xff]   ;;  %v5415_v2 = vld [vmem:[#allocation8 + $0x54c] ss:$28 sps:$4 sm:$0xff]  }
 0x333   :  { %3842 = vmatprep.subr.bf16.mxu0 %v5340_v3  ;;  %3924 = vmatprep.subr.bf16.mxu1 %v5343_v4  ;;  %v5410_v3 = vld [vmem:[#allocation8 + $0x540] ss:$28 sps:$4 sm:$0xff]   ;;  %v5413_v4 = vld [vmem:[#allocation8 + $0x548] ss:$28 sps:$4 sm:$0xff]  }
 0x336   :  { %3843 = vmatpush1.bf16.msra.mxu0 %v5338_v5  ;;  %3925 = vmatpush1.bf16.msra.mxu1 %v5341_v6  ;;  %v5418_v5 = vld [vmem:[#allocation8 + $0x57c] ss:$28 sps:$4 sm:$0xff]   ;;  %v5421_v6 = vld [vmem:[#allocation8 + $0x584] ss:$28 sps:$4 sm:$0xff]  }
 0x337   :  { %3844 = vmatprep.subr.bf16.mxu0 %v5346_v7  ;;  %3926 = vmatprep.subr.bf16.mxu1 %v5349_v8  ;;  %v5416_v7 = vld [vmem:[#allocation8 + $0x578] ss:$28 sps:$4 sm:$0xff]   ;;  %v5419_v8 = vld [vmem:[#allocation8 + $0x580] ss:$28 sps:$4 sm:$0xff]  }
 0x33a   :  { %3845 = vmatpush1.bf16.msra.mxu0 %v5344_v9  ;;  %3927 = vmatpush1.bf16.msra.mxu1 %v5347_v10  ;;  %v5424_v9 = vld [vmem:[#allocation8 + $0x5b4] ss:$28 sps:$4 sm:$0xff]   ;;  %v5427_v10 = vld [vmem:[#allocation8 + $0x5bc] ss:$28 sps:$4 sm:$0xff]  }
 0x33b   :  { %3846 = vmatprep.subr.bf16.mxu0 %v5352_v11  ;;  %3928 = vmatprep.subr.bf16.mxu1 %v5355_v12  ;;  %v5422_v11 = vld [vmem:[#allocation8 + $0x5b0] ss:$28 sps:$4 sm:$0xff]   ;;  %v5425_v12 = vld [vmem:[#allocation8 + $0x5b8] ss:$28 sps:$4 sm:$0xff]  }
 0x33e   :  { %3847 = vmatpush1.bf16.msra.mxu0 %v5350_v13  ;;  %3929 = vmatpush1.bf16.msra.mxu1 %v5353_v14  ;;  %v5430_v13 = vld [vmem:[#allocation8 + $0x5ec] ss:$28 sps:$4 sm:$0xff]   ;;  %v5433_v14 = vld [vmem:[#allocation8 + $0x5f4] ss:$28 sps:$4 sm:$0xff]  }
 0x33f   :  { %3848 = vmatprep.subr.bf16.mxu0 %v5358_v15  ;;  %3930 = vmatprep.subr.bf16.mxu1 %v5361_v17  ;;  %v5428_v15 = vld [vmem:[#allocation8 + $0x5e8] ss:$28 sps:$4 sm:$0xff]   ;;  %v5431_v17 = vld [vmem:[#allocation8 + $0x5f0] ss:$28 sps:$4 sm:$0xff]  }
 0x342   :  { %3849 = vmatpush1.bf16.msra.mxu0 %v5356_v18  ;;  %3931 = vmatpush1.bf16.msra.mxu1 %v5359_v19  ;;  %v5436_v18 = vld [vmem:[#allocation8 + $0x624] ss:$28 sps:$4 sm:$0xff]   ;;  %v5439_v19 = vld [vmem:[#allocation8 + $0x62c] ss:$28 sps:$4 sm:$0xff]  }
 0x343   :  { %3859 = vmatprep.subr.bf16.mxu0 %v5364_v20  ;;  %3941 = vmatprep.subr.bf16.mxu1 %v5367_v21  ;;  %v5434_v20 = vld [vmem:[#allocation8 + $0x620] ss:$28 sps:$4 sm:$0xff]   ;;  %v5437_v21 = vld [vmem:[#allocation8 + $0x628] ss:$28 sps:$4 sm:$0xff]  }
 0x3d8   :  { %v2354_v22 = vpop.f32.mrb[8].mxu0  ;;  %v5875_v23 = vpop.f32.mrb[12].mxu1 }
 0x3d9   :  { %v2402_v24 = vmax.f32 %v2354_v22, 0.0  ;;  %v2356_v25 = vpop.f32.mrb[9].mxu0  ;;  %v2397_v26 = vpop.f32.mrb[13].mxu1  ;;  %v5442_v22 = vld [vmem:[#allocation8 + $0x65c] ss:$28 sps:$4 sm:$0xff]  }
 0x3da   :  { %v2403_v27 = vmax.f32 %v2356_v25, 0.0  ;;  %v2358_v28 = vpop.f32.mrb[10].mxu0  ;;  %v2399_v16 = vpop.f32.mrb[14].mxu1  ;;  %v2405_v29 = vmax.f32 %v2397_v26, 0.0  ;;  %v5440_v25 = vld [vmem:[#allocation8 + $0x658] ss:$28 sps:$4 sm:$0xff]  }
 0x3db   :  { %v2359_v30 = vpop.f32.mrb[11].mxu0  ;;  %v2400_v31 = vpop.f32.mrb[15].mxu1  ;;  %v5879_v35 = vpack.c.bf16 %v2402_v24, %v2402_v24  ;;  %v5445_v24 = vld [vmem:[#allocation8 + $0x664] ss:$28 sps:$4 sm:$0xff]   ;;  %v5451_v28 = vld [vmem:[#allocation8 + $0x69c] ss:$28 sps:$4 sm:$0xff]  }
 0x3dc   :  { %v5877_v32 = vpack.c.bf16 %v2403_v27, %v2403_v27  ;;  %v5883_v38 = vpack.c.bf16 %v2405_v29, %v2405_v29  ;;  %v5443_v26 = vld [vmem:[#allocation8 + $0x660] ss:$28 sps:$4 sm:$0xff]   ;;  %v5448_v27 = vld [vmem:[#allocation8 + $0x694] ss:$28 sps:$4 sm:$0xff]   ;;  %v5454_v30 = vld [vmem:[#allocation8 + $0x6cc] ss:$28 sps:$4 sm:$0xff]  }
 0x3dd   :  { %v5446_v16 = vld [vmem:[#allocation8 + $0x690] ss:$28 sps:$4 sm:$0xff]   ;;  %v5449_v29 = vld [vmem:[#allocation8 + $0x698] ss:$28 sps:$4 sm:$0xff]  }
 0x3de   :  { %3850 = vmatprep.mubr.bf16.mxu0 %v5877_v32  ;;  %3932 = vmatprep.mubr.bf16.mxu1 %v5877_v32  ;;  %v5457_v31 = vld [vmem:[#allocation8 + $0x6d4] ss:$28 sps:$4 sm:$0xff]  }
 0x3df   :  { %3851 = vmatmul.mubr.bf16.vlgmr.msra.gmra.mrb[12].mxu0 %v5879_v35  ;;  %3933 = vmatmul.mubr.bf16.vlgmr.msra.gmra.mrb[16].mxu1 %v5879_v35 }
 0x3e0   :  { %3860 = vmatpush1.bf16.msra.mxu0 %v5362_v33  ;;  %3942 = vmatpush1.bf16.msra.mxu1 %v5365_v34  ;;  %v5452_v33 = vld [vmem:[#allocation8 + $0x6c8] ss:$28 sps:$4 sm:$0xff]   ;;  %v5455_v34 = vld [vmem:[#allocation8 + $0x6d0] ss:$28 sps:$4 sm:$0xff]  }
 0x3e1   :  { %3891 = vmatprep.mubr.bf16.mxu0 %v5883_v38  ;;  %3973 = vmatprep.mubr.bf16.mxu1 %v5883_v38 }
 0x3e2   :  { %3861 = vmatprep.subr.bf16.mxu0 %v5370_v36  ;;  %3943 = vmatprep.subr.bf16.mxu1 %v5373_v37  ;;  %v2404_v36 = vmax.f32 %v5875_v23, 0.0  ;;  %v5460_v37 = vld [vmem:[#allocation8 + $0x14] ss:$28 sps:$4 sm:$0xff]   ;;  %v5463_v23 = vld [vmem:[#allocation8 + $0x48] ss:$28 sps:$4 sm:$0xff]  }
 0x3e4   :  { %3862 = vmatpush1.bf16.msra.mxu0 %v5368_v39  ;;  %3944 = vmatpush1.bf16.msra.mxu1 %v5371_v40  ;;  %v5461_v39 = vld [vmem:[#allocation8 + $0x1d8] ss:$28 sps:$4 sm:$0xff]   ;;  %v5458_v40 = vld [vmem:[#allocation8 + $0x10] ss:$28 sps:$4 sm:$0xff]  }
 0x3e5   :  { %3863 = vmatprep.subr.bf16.mxu0 %v5376_v41  ;;  %3945 = vmatprep.subr.bf16.mxu1 %v5379_v42  ;;  %v5890_v41 = vpack.c.bf16 %v2404_v36, %v2404_v36  ;;  %v5462_v42 = vld [vmem:[#allocation8 + $0x18] ss:$28 sps:$4 sm:$0xff]  }
 0x3e6   :  { %v5535_v36 = vld [vmem:[#allocation8 + $0x35c] ss:$28 sps:$4 sm:$0xff]  }
 0x3e8   :  { %3864 = vmatpush1.bf16.msra.mxu0 %v5374_v43  ;;  %3946 = vmatpush1.bf16.msra.mxu1 %v5377_v44  ;;  %v5465_v43 = vld [vmem:[#allocation8 + $0x4c] ss:$28 sps:$4 sm:$0xff]  }
 0x3e9   :  { %3865 = vmatprep.subr.bf16.mxu0 %v5382_v45  ;;  %3947 = vmatprep.subr.bf16.mxu1 %v5385_v46  ;;  %v5466_v44 = vld [vmem:[#allocation8 + $0x210] ss:$28 sps:$4 sm:$0xff]   ;;  %v5470_v46 = vld [vmem:[#allocation8 + $0x84] ss:$28 sps:$4 sm:$0xff]  }
 0x3ea   :  { %v5467_v45 = vld [vmem:[#allocation8 + $0x50] ss:$28 sps:$4 sm:$0xff]  }
 0x3ec   :  { %3866 = vmatpush1.bf16.msra.mxu0 %v5380_v47  ;;  %3948 = vmatpush1.bf16.msra.mxu1 %v5383_v48  ;;  %v5471_v47 = vld [vmem:[#allocation8 + $0x248] ss:$28 sps:$4 sm:$0xff]   ;;  %v5468_v48 = vld [vmem:[#allocation8 + $0x80] ss:$28 sps:$4 sm:$0xff]  }
 0x3ed   :  { %3867 = vmatprep.subr.bf16.mxu0 %v5388_v0  ;;  %3949 = vmatprep.subr.bf16.mxu1 %v5391_v49  ;;  %v5472_v0 = vld [vmem:[#allocation8 + $0x88] ss:$28 sps:$4 sm:$0xff]   ;;  %v5475_v49 = vld [vmem:[#allocation8 + $0xbc] ss:$28 sps:$4 sm:$0xff]  }
 0x3f0   :  { %3868 = vmatpush1.bf16.msra.mxu0 %v5386_v50  ;;  %3950 = vmatpush1.bf16.msra.mxu1 %v5389_v51  ;;  %v5476_v50 = vld [vmem:[#allocation8 + $0x280] ss:$28 sps:$4 sm:$0xff]   ;;  %v5473_v51 = vld [vmem:[#allocation8 + $0xb8] ss:$28 sps:$4 sm:$0xff]  }
 0x3f1   :  { %3869 = vmatprep.subr.bf16.mxu0 %v5394_v52  ;;  %3951 = vmatprep.subr.bf16.mxu1 %v5397_v53  ;;  %v5477_v52 = vld [vmem:[#allocation8 + $0xc0] ss:$28 sps:$4 sm:$0xff]   ;;  %v5480_v53 = vld [vmem:[#allocation8 + $0xf4] ss:$28 sps:$4 sm:$0xff]  }
 0x3f4   :  { %3870 = vmatpush1.bf16.msra.mxu0 %v5392_v54  ;;  %3952 = vmatpush1.bf16.msra.mxu1 %v5395_v55  ;;  %v5478_v54 = vld [vmem:[#allocation8 + $0xf0] ss:$28 sps:$4 sm:$0xff]   ;;  %v5482_v55 = vld [vmem:[#allocation8 + $0xf8] ss:$28 sps:$4 sm:$0xff]  }
 0x3f5   :  { %3871 = vmatprep.subr.bf16.mxu0 %v5400_v56  ;;  %3953 = vmatprep.subr.bf16.mxu1 %v5403_v57  ;;  %v5485_v56 = vld [vmem:[#allocation8 + $0x12c] ss:$28 sps:$4 sm:$0xff]  }
 0x3f6   :  { %v5486_v57 = vld [vmem:[#allocation8 + $0x2f0] ss:$28 sps:$4 sm:$0xff]  }
 0x3f8   :  { %3872 = vmatpush1.bf16.msra.mxu0 %v5398_v58  ;;  %3954 = vmatpush1.bf16.msra.mxu1 %v5401_v59  ;;  %v5483_v58 = vld [vmem:[#allocation8 + $0x128] ss:$28 sps:$4 sm:$0xff]   ;;  %v5487_v59 = vld [vmem:[#allocation8 + $0x130] ss:$28 sps:$4 sm:$0xff]  }
 0x3f9   :  { %3873 = vmatprep.subr.bf16.mxu0 %v5406_v60  ;;  %3955 = vmatprep.subr.bf16.mxu1 %v5409_v61  ;;  %v5490_v60 = vld [vmem:[#allocation8 + $0x164] ss:$28 sps:$4 sm:$0xff]  }
 0x3fa   :  { %v5491_v61 = vld [vmem:[#allocation8 + $0x328] ss:$28 sps:$4 sm:$0xff]  }
 0x3fc   :  { %3874 = vmatpush1.bf16.msra.mxu0 %v5404_v62  ;;  %3956 = vmatpush1.bf16.msra.mxu1 %v5407_v63  ;;  %v5488_v62 = vld [vmem:[#allocation8 + $0x160] ss:$28 sps:$4 sm:$0xff]   ;;  %v5492_v63 = vld [vmem:[#allocation8 + $0x168] ss:$28 sps:$4 sm:$0xff]  }
 0x3fd   :  { %3875 = vmatprep.subr.bf16.mxu0 %v5412_v1  ;;  %3957 = vmatprep.subr.bf16.mxu1 %v5415_v2  ;;  %v5495_v1 = vld [vmem:[#allocation8 + $0x19c] ss:$28 sps:$4 sm:$0xff]  }
 0x3fe   :  { %v5496_v2 = vld [vmem:[#allocation8 + $0x360] ss:$28 sps:$4 sm:$0xff]  }
 0x400   :  { %3876 = vmatpush1.bf16.msra.mxu0 %v5410_v3  ;;  %3958 = vmatpush1.bf16.msra.mxu1 %v5413_v4  ;;  %v5493_v3 = vld [vmem:[#allocation8 + $0x198] ss:$28 sps:$4 sm:$0xff]   ;;  %v5497_v4 = vld [vmem:[#allocation8 + $0x1a0] ss:$28 sps:$4 sm:$0xff]  }
 0x401   :  { %3877 = vmatprep.subr.bf16.mxu0 %v5418_v5  ;;  %3959 = vmatprep.subr.bf16.mxu1 %v5421_v6  ;;  %v5500_v5 = vld [vmem:[#allocation8 + $0x1d4] ss:$28 sps:$4 sm:$0xff]  }
 0x402   :  { %v5501_v6 = vld [vmem:[#allocation8 + $0x558] ss:$28 sps:$4 sm:$0xff]  }
 0x404   :  { %3878 = vmatpush1.bf16.msra.mxu0 %v5416_v7  ;;  %3960 = vmatpush1.bf16.msra.mxu1 %v5419_v8  ;;  %v5498_v7 = vld [vmem:[#allocation8 + $0x1d0] ss:$28 sps:$4 sm:$0xff]   ;;  %v5502_v8 = vld [vmem:[#allocation8 + $0x398] ss:$28 sps:$4 sm:$0xff]  }
 0x405   :  { %3879 = vmatprep.subr.bf16.mxu0 %v5424_v9  ;;  %3961 = vmatprep.subr.bf16.mxu1 %v5427_v10  ;;  %v5505_v9 = vld [vmem:[#allocation8 + $0x20c] ss:$28 sps:$4 sm:$0xff]  }
 0x406   :  { %v5506_v10 = vld [vmem:[#allocation8 + $0x590] ss:$28 sps:$4 sm:$0xff]  }
 0x408   :  { %3880 = vmatpush1.bf16.msra.mxu0 %v5422_v11  ;;  %3962 = vmatpush1.bf16.msra.mxu1 %v5425_v12  ;;  %v5503_v11 = vld [vmem:[#allocation8 + $0x208] ss:$28 sps:$4 sm:$0xff]   ;;  %v5507_v12 = vld [vmem:[#allocation8 + $0x3d0] ss:$28 sps:$4 sm:$0xff]  }
 0x409   :  { %3881 = vmatprep.subr.bf16.mxu0 %v5430_v13  ;;  %3963 = vmatprep.subr.bf16.mxu1 %v5433_v14  ;;  %v5510_v13 = vld [vmem:[#allocation8 + $0x244] ss:$28 sps:$4 sm:$0xff]  }
 0x40a   :  { %v5511_v14 = vld [vmem:[#allocation8 + $0x5c8] ss:$28 sps:$4 sm:$0xff]  }
 0x40c   :  { %3882 = vmatpush1.bf16.msra.mxu0 %v5428_v15  ;;  %3964 = vmatpush1.bf16.msra.mxu1 %v5431_v17  ;;  %v5508_v15 = vld [vmem:[#allocation8 + $0x240] ss:$28 sps:$4 sm:$0xff]   ;;  %v5512_v17 = vld [vmem:[#allocation8 + $0x408] ss:$28 sps:$4 sm:$0xff]  }
 0x40d   :  { %3883 = vmatprep.subr.bf16.mxu0 %v5436_v18  ;;  %3965 = vmatprep.subr.bf16.mxu1 %v5439_v19  ;;  %v5515_v18 = vld [vmem:[#allocation8 + $0x27c] ss:$28 sps:$4 sm:$0xff]  }
 0x40e   :  { %v5516_v19 = vld [vmem:[#allocation8 + $0x600] ss:$28 sps:$4 sm:$0xff]  }
 0x410   :  { %3884 = vmatpush1.bf16.msra.mxu0 %v5434_v20  ;;  %3966 = vmatpush1.bf16.msra.mxu1 %v5437_v21  ;;  %v5513_v20 = vld [vmem:[#allocation8 + $0x278] ss:$28 sps:$4 sm:$0xff]   ;;  %v5517_v21 = vld [vmem:[#allocation8 + $0x440] ss:$28 sps:$4 sm:$0xff]  }
 0x411   :  { %3885 = vmatprep.subr.bf16.mxu0 %v5442_v22  ;;  %3967 = vmatprep.subr.bf16.mxu1 %v5445_v24  ;;  %v5520_v22 = vld [vmem:[#allocation8 + $0x2b4] ss:$28 sps:$4 sm:$0xff]  }
 0x412   :  { %v5521_v24 = vld [vmem:[#allocation8 + $0x638] ss:$28 sps:$4 sm:$0xff]  }
 0x414   :  { %3886 = vmatpush1.bf16.msra.mxu0 %v5440_v25  ;;  %3968 = vmatpush1.bf16.msra.mxu1 %v5443_v26  ;;  %v5518_v25 = vld [vmem:[#allocation8 + $0x2b0] ss:$28 sps:$4 sm:$0xff]   ;;  %v5522_v26 = vld [vmem:[#allocation8 + $0x478] ss:$28 sps:$4 sm:$0xff]  }
 0x415   :  { %3887 = vmatprep.subr.bf16.mxu0 %v5448_v27  ;;  %3969 = vmatprep.subr.bf16.mxu1 %v5451_v28  ;;  %v5525_v27 = vld [vmem:[#allocation8 + $0x2ec] ss:$28 sps:$4 sm:$0xff]  }
 0x416   :  { %v5526_v28 = vld [vmem:[#allocation8 + $0x670] ss:$28 sps:$4 sm:$0xff]  }
 0x418   :  { %3888 = vmatpush1.bf16.msra.mxu0 %v5446_v16  ;;  %3970 = vmatpush1.bf16.msra.mxu1 %v5449_v29  ;;  %v5523_v16 = vld [vmem:[#allocation8 + $0x2e8] ss:$28 sps:$4 sm:$0xff]   ;;  %v5527_v29 = vld [vmem:[#allocation8 + $0x4b0] ss:$28 sps:$4 sm:$0xff]  }
 0x419   :  { %3889 = vmatprep.subr.bf16.mxu0 %v5454_v30  ;;  %3971 = vmatprep.subr.bf16.mxu1 %v5457_v31  ;;  %v5530_v30 = vld [vmem:[#allocation8 + $0x324] ss:$28 sps:$4 sm:$0xff]  }
 0x41a   :  { %v5531_v31 = vld [vmem:[#allocation8 + $0x6a8] ss:$28 sps:$4 sm:$0xff]  }
 0x41c   :  { %3890 = vmatpush1.bf16.msra.mxu0 %v5452_v33  ;;  %3972 = vmatpush1.bf16.msra.mxu1 %v5455_v34  ;;  %v5528_v33 = vld [vmem:[#allocation8 + $0x320] ss:$28 sps:$4 sm:$0xff]   ;;  %v5532_v34 = vld [vmem:[#allocation8 + $0x4e8] ss:$28 sps:$4 sm:$0xff]  }
 0x41d   :  { %3982 = vmatprep.subr.bf16.mxu0 %v5460_v37  ;;  %4752 = vmatprep.subr.bf16.mxu1 %v5461_v39  ;;  %v5536_v37 = vld [vmem:[#allocation8 + $0x6e0] ss:$28 sps:$4 sm:$0xff]   ;;  %v5533_v39 = vld [vmem:[#allocation8 + $0x358] ss:$28 sps:$4 sm:$0xff]  }
 0x41f   :  { %3892 = vmatmul.mubr.bf16.vlgmr.msra.gmra.mrb[12].mxu0 %v5890_v41  ;;  %3974 = vmatmul.mubr.bf16.vlgmr.msra.gmra.mrb[16].mxu1 %v5890_v41 }
 0x420   :  { %3983 = vmatpush1.bf16.msra.mxu0 %v5458_v40  ;;  %4014 = vmatprep.mubr.bf16.mxu0 %v5877_v32  ;;  %v5537_v40 = vld [vmem:[#allocation8 + $0x520] ss:$28 sps:$4 sm:$0xff]  }
 0x421   :  { %4753 = vmatpush3.bf16.msra.mxu1 %v5462_v42  ;;  %4096 = vmatprep.mubr.bf16.mxu1 %v5877_v32  ;;  %v5481_v32 = vld [vmem:[#allocation8 + $0x2b8] ss:$28 sps:$4 sm:$0xff]  }
 0x422   :  { %3984 = vmatprep.subr.bf16.mxu0 %v5465_v43  ;;  %4754 = vmatprep.subr.bf16.mxu1 %v5466_v44  ;;  %v5540_v42 = vld [vmem:[#allocation8 + $0x394] ss:$28 sps:$4 sm:$0xff]   ;;  %v5543_v44 = vld [vmem:[#allocation8 + $0x3cc] ss:$28 sps:$4 sm:$0xff]  }
 0x423   :  { %v5538_v43 = vld [vmem:[#allocation8 + $0x390] ss:$28 sps:$4 sm:$0xff]  }
 0x424   :  { %3985 = vmatpush1.bf16.msra.mxu0 %v5463_v23  ;;  %v5541_v23 = vld [vmem:[#allocation8 + $0x3c8] ss:$28 sps:$4 sm:$0xff]  }
 0x425   :  { %4755 = vmatpush3.bf16.msra.mxu1 %v5467_v45  ;;  %3986 = vmatprep.subr.bf16.mxu0 %v5470_v46  ;;  %v5546_v45 = vld [vmem:[#allocation8 + $0x404] ss:$28 sps:$4 sm:$0xff]  }
 0x426   :  { %4756 = vmatprep.subr.bf16.mxu1 %v5471_v47  ;;  %v5544_v46 = vld [vmem:[#allocation8 + $0x400] ss:$28 sps:$4 sm:$0xff]  }
 0x427   :  { %v5549_v47 = vld [vmem:[#allocation8 + $0x43c] ss:$28 sps:$4 sm:$0xff]  }
 0x428   :  { %3987 = vmatpush1.bf16.msra.mxu0 %v5468_v48  ;;  %v5547_v48 = vld [vmem:[#allocation8 + $0x438] ss:$28 sps:$4 sm:$0xff]  }
 0x429   :  { %4757 = vmatpush3.bf16.msra.mxu1 %v5472_v0  ;;  %3988 = vmatprep.subr.bf16.mxu0 %v5475_v49  ;;  %v5552_v0 = vld [vmem:[#allocation8 + $0x474] ss:$28 sps:$4 sm:$0xff]  }
 0x42a   :  { %4758 = vmatprep.subr.bf16.mxu1 %v5476_v50  ;;  %v5550_v49 = vld [vmem:[#allocation8 + $0x470] ss:$28 sps:$4 sm:$0xff]   ;;  %v5553_v50 = vld [vmem:[#allocation8 + $0x4a8] ss:$28 sps:$4 sm:$0xff]  }
 0x42c   :  { %3989 = vmatpush1.bf16.msra.mxu0 %v5473_v51  ;;  %v5558_v51 = vld [vmem:[#allocation8 + $0x4e4] ss:$28 sps:$4 sm:$0xff]  }
 0x42d   :  { %4759 = vmatpush3.bf16.msra.mxu1 %v5477_v52  ;;  %3990 = vmatprep.subr.bf16.mxu0 %v5480_v53  ;;  %v5561_v52 = vld [vmem:[#allocation8 + $0x51c] ss:$28 sps:$4 sm:$0xff]  }
 0x42e   :  { %4760 = vmatprep.subr.bf16.mxu1 %v5481_v32  ;;  %v5559_v53 = vld [vmem:[#allocation8 + $0x518] ss:$28 sps:$4 sm:$0xff]  }
 0x42f   :  { %v5564_v32 = vld [vmem:[#allocation8 + $0x554] ss:$28 sps:$4 sm:$0xff]  }
 0x430   :  { %3991 = vmatpush1.bf16.msra.mxu0 %v5478_v54  ;;  %v5562_v54 = vld [vmem:[#allocation8 + $0x550] ss:$28 sps:$4 sm:$0xff]  }
 0x431   :  { %4761 = vmatpush3.bf16.msra.mxu1 %v5482_v55  ;;  %3992 = vmatprep.subr.bf16.mxu0 %v5485_v56  ;;  %v5567_v55 = vld [vmem:[#allocation8 + $0x58c] ss:$28 sps:$4 sm:$0xff]  }
 0x432   :  { %4762 = vmatprep.subr.bf16.mxu1 %v5486_v57  ;;  %v5565_v56 = vld [vmem:[#allocation8 + $0x588] ss:$28 sps:$4 sm:$0xff]  }
 0x433   :  { %v5570_v57 = vld [vmem:[#allocation8 + $0x5c4] ss:$28 sps:$4 sm:$0xff]  }
 0x434   :  { %3993 = vmatpush1.bf16.msra.mxu0 %v5483_v58  ;;  %v5568_v58 = vld [vmem:[#allocation8 + $0x5c0] ss:$28 sps:$4 sm:$0xff]  }
 0x435   :  { %4763 = vmatpush3.bf16.msra.mxu1 %v5487_v59  ;;  %3994 = vmatprep.subr.bf16.mxu0 %v5490_v60  ;;  %v5573_v59 = vld [vmem:[#allocation8 + $0x5fc] ss:$28 sps:$4 sm:$0xff]  }
 0x436   :  { %4764 = vmatprep.subr.bf16.mxu1 %v5491_v61  ;;  %v5571_v60 = vld [vmem:[#allocation8 + $0x5f8] ss:$28 sps:$4 sm:$0xff]  }
 0x437   :  { %v5576_v61 = vld [vmem:[#allocation8 + $0x634] ss:$28 sps:$4 sm:$0xff]  }
 0x438   :  { %3995 = vmatpush1.bf16.msra.mxu0 %v5488_v62  ;;  %v5574_v62 = vld [vmem:[#allocation8 + $0x630] ss:$28 sps:$4 sm:$0xff]  }
 0x439   :  { %4765 = vmatpush3.bf16.msra.mxu1 %v5492_v63  ;;  %3996 = vmatprep.subr.bf16.mxu0 %v5495_v1  ;;  %v5579_v63 = vld [vmem:[#allocation8 + $0x66c] ss:$28 sps:$4 sm:$0xff]  }
 0x43a   :  { %4766 = vmatprep.subr.bf16.mxu1 %v5496_v2  ;;  %v5577_v1 = vld [vmem:[#allocation8 + $0x668] ss:$28 sps:$4 sm:$0xff]  }
 0x43b   :  { %v5582_v2 = vld [vmem:[#allocation8 + $0x6a4] ss:$28 sps:$4 sm:$0xff]  }
 0x43c   :  { %3997 = vmatpush1.bf16.msra.mxu0 %v5493_v3  ;;  %v5580_v3 = vld [vmem:[#allocation8 + $0x6a0] ss:$28 sps:$4 sm:$0xff]  }
 0x43d   :  { %4767 = vmatpush3.bf16.msra.mxu1 %v5497_v4  ;;  %3998 = vmatprep.subr.bf16.mxu0 %v5500_v5  ;;  %v5585_v4 = vld [vmem:[#allocation8 + $0x6dc] ss:$28 sps:$4 sm:$0xff]  }
 0x43e   :  { %4774 = vmatprep.subr.bf16.mxu1 %v5501_v6  ;;  %v5583_v5 = vld [vmem:[#allocation8 + $0x6d8] ss:$28 sps:$4 sm:$0xff]  }
 0x440   :  { %4097 = vmatmul.mubr.bf16.vlgmr.msra.gmra.mrb[20].mxu1 %v5879_v35  ;;  %3999 = vmatpush1.bf16.msra.mxu0 %v5498_v7 }
 0x441   :  { %4775 = vmatpush3.bf16.msra.mxu1 %v5502_v8  ;;  %4136 = vmatprep.mubr.bf16.mxu1 %v5883_v38 }
 0x442   :  { %4000 = vmatprep.subr.bf16.mxu0 %v5505_v9  ;;  %4776 = vmatprep.subr.bf16.mxu1 %v5506_v10 }
 0x444   :  { %4001 = vmatpush1.bf16.msra.mxu0 %v5503_v11 }
 0x445   :  { %4777 = vmatpush3.bf16.msra.mxu1 %v5507_v12  ;;  %4002 = vmatprep.subr.bf16.mxu0 %v5510_v13 }
 0x446   :  { %4778 = vmatprep.subr.bf16.mxu1 %v5511_v14 }
 0x448   :  { %4003 = vmatpush1.bf16.msra.mxu0 %v5508_v15 }
 0x449   :  { %4779 = vmatpush3.bf16.msra.mxu1 %v5512_v17  ;;  %4004 = vmatprep.subr.bf16.mxu0 %v5515_v18 }
 0x44a   :  { %4780 = vmatprep.subr.bf16.mxu1 %v5516_v19 }
 0x44c   :  { %4005 = vmatpush1.bf16.msra.mxu0 %v5513_v20 }
 0x44d   :  { %4781 = vmatpush3.bf16.msra.mxu1 %v5517_v21  ;;  %4006 = vmatprep.subr.bf16.mxu0 %v5520_v22 }
 0x44e   :  { %4782 = vmatprep.subr.bf16.mxu1 %v5521_v24 }
 0x450   :  { %4007 = vmatpush1.bf16.msra.mxu0 %v5518_v25 }
 0x451   :  { %4783 = vmatpush3.bf16.msra.mxu1 %v5522_v26  ;;  %4008 = vmatprep.subr.bf16.mxu0 %v5525_v27 }
 0x452   :  { %4784 = vmatprep.subr.bf16.mxu1 %v5526_v28 }
 0x454   :  { %4009 = vmatpush1.bf16.msra.mxu0 %v5523_v16 }
 0x455   :  { %4785 = vmatpush3.bf16.msra.mxu1 %v5527_v29  ;;  %4010 = vmatprep.subr.bf16.mxu0 %v5530_v30 }
 0x456   :  { %4786 = vmatprep.subr.bf16.mxu1 %v5531_v31 }
 0x458   :  { %4011 = vmatpush1.bf16.msra.mxu0 %v5528_v33 }
 0x459   :  { %4787 = vmatpush3.bf16.msra.mxu1 %v5532_v34  ;;  %4012 = vmatprep.subr.bf16.mxu0 %v5535_v36 }
 0x45a   :  { %4788 = vmatprep.subr.bf16.mxu1 %v5536_v37 }
 0x45c   :  { %4013 = vmatpush1.bf16.msra.mxu0 %v5533_v39 }
 0x45d   :  { %4789 = vmatpush3.bf16.msra.mxu1 %v5537_v40  ;;  %4023 = vmatprep.subr.bf16.mxu0 %v5540_v42 }
 0x45f   :  { %4015 = vmatmul.mubr.bf16.vlgmr.msra.gmra.mrb[16].mxu0 %v5879_v35  ;;  %v5555_v35 = vld [vmem:[#allocation8 + $0x4ac] ss:$28 sps:$4 sm:$0xff]  }
 0x460   :  { %4137 = vmatmul.mubr.bf16.vlgmr.msra.gmra.mrb[24].mxu1 %v5890_v41  ;;  %4024 = vmatpush1.bf16.msra.mxu0 %v5538_v43 }
 0x461   :  { %4055 = vmatprep.mubr.bf16.mxu0 %v5883_v38  ;;  %4025 = vmatprep.subr.bf16.mxu0 %v5543_v44  ;;  %v5556_v38 = vld [vmem:[#allocation8 + $0x4e0] ss:$28 sps:$4 sm:$0xff]  }
 0x464   :  { %4026 = vmatpush1.bf16.msra.mxu0 %v5541_v23 }
 0x465   :  { %4027 = vmatprep.subr.bf16.mxu0 %v5546_v45 }
 0x468   :  { %4028 = vmatpush1.bf16.msra.mxu0 %v5544_v46 }
 0x469   :  { %4029 = vmatprep.subr.bf16.mxu0 %v5549_v47 }
 0x46c   :  { %4030 = vmatpush1.bf16.msra.mxu0 %v5547_v48 }
 0x46d   :  { %4031 = vmatprep.subr.bf16.mxu0 %v5552_v0 }
 0x470   :  { %4032 = vmatpush1.bf16.msra.mxu0 %v5550_v49 }
 0x471   :  { %4033 = vmatprep.subr.bf16.mxu0 %v5555_v35 }
 0x474   :  { %4034 = vmatpush1.bf16.msra.mxu0 %v5553_v50 }
 0x475   :  { %4035 = vmatprep.subr.bf16.mxu0 %v5558_v51 }
 0x478   :  { %4036 = vmatpush1.bf16.msra.mxu0 %v5556_v38 }
 0x479   :  { %4037 = vmatprep.subr.bf16.mxu0 %v5561_v52 }
 0x47c   :  { %4038 = vmatpush1.bf16.msra.mxu0 %v5559_v53 }
 0x47d   :  { %4039 = vmatprep.subr.bf16.mxu0 %v5564_v32 }
 0x480   :  { %4040 = vmatpush1.bf16.msra.mxu0 %v5562_v54 }
 0x481   :  { %4041 = vmatprep.subr.bf16.mxu0 %v5567_v55 }
 0x484   :  { %4042 = vmatpush1.bf16.msra.mxu0 %v5565_v56 }
 0x485   :  { %4043 = vmatprep.subr.bf16.mxu0 %v5570_v57 }
 0x488   :  { %4044 = vmatpush1.bf16.msra.mxu0 %v5568_v58 }
 0x489   :  { %4045 = vmatprep.subr.bf16.mxu0 %v5573_v59 }
 0x48c   :  { %4046 = vmatpush1.bf16.msra.mxu0 %v5571_v60 }
 0x48d   :  { %4047 = vmatprep.subr.bf16.mxu0 %v5576_v61 }
 0x490   :  { %4048 = vmatpush1.bf16.msra.mxu0 %v5574_v62 }
 0x491   :  { %4049 = vmatprep.subr.bf16.mxu0 %v5579_v63 }
 0x494   :  { %4050 = vmatpush1.bf16.msra.mxu0 %v5577_v1 }
 0x495   :  { %4051 = vmatprep.subr.bf16.mxu0 %v5582_v2 }
 0x498   :  { %4052 = vmatpush1.bf16.msra.mxu0 %v5580_v3 }
 0x499   :  { %4053 = vmatprep.subr.bf16.mxu0 %v5585_v4 }
 0x49c   :  { %4054 = vmatpush1.bf16.msra.mxu0 %v5583_v5 }
 0x49f   :  { %4056 = vmatmul.mubr.bf16.vlgmr.msra.gmra.mrb[16].mxu0 %v5890_v41 }
 0x4f2   :  { %v3893_v6 = vpop.f32.mrb[12].mxu0  ;;  %v3975_v7 = vpop.f32.mrb[16].mxu1 }
 0x4f3   :  { %v4144_v8 = vmax.f32 %v3893_v6, 0.0  ;;  %v4146_v9 = vmax.f32 %v3975_v7, 0.0  ;;  %v3895_v10 = vpop.f32.mrb[13].mxu0  ;;  %v3977_v11 = vpop.f32.mrb[17].mxu1 }
 0x4f4   :  { %v4145_v12 = vmax.f32 %v3895_v10, 0.0  ;;  %v4147_v13 = vmax.f32 %v3977_v11, 0.0  ;;  %v3897_v14 = vpop.f32.mrb[14].mxu0  ;;  %v3979_v15 = vpop.f32.mrb[18].mxu1 }
 0x4f5   :  { %4151 = vst [vmem:[#allocation10] sm:$0xff] %v4144_v8  ;;  %4153 = vst [vmem:[#allocation10 + $0x10] sm:$0xff] %v4146_v9  ;;  %v3898_v17 = vpop.f32.mrb[15].mxu0  ;;  %v3980_v18 = vpop.f32.mrb[19].mxu1 }
 0x4f6   :  { %4152 = vst [vmem:[#allocation10 + $0x8] sm:$0xff] %v4145_v12  ;;  %4154 = vst [vmem:[#allocation10 + $0x18] sm:$0xff] %v4147_v13 }
 0x4f7   :  { %5686 = shalt.err (!%p5683_p8)
}
 0x4f8   :  { %s5687_s11 = scalar_lea.hbm %s5932_s6, 128 }
 0x4f9   :  { %p5688_p9 = scmp.ne.s32.totalorder %s5932_s6, %s5687_s11  ;;  %p5691_p10 = scmp.lt.u32.totalorder %s5687_s11, %s5932_s6 }
 0x4fb   :  { %p5693_p11 = pnand %p5691_p10, %p5688_p9 }
 0x4fd   :  { %5696 = shalt.err (!%p5693_p11)
}
 0x4fe   :  { %4177 = dma.vmem_to_hbm [thread:$0]  %s4175_s8, 128, %s5932_s6, [#allocation12]  }
 0x4ff   :  { %s5741_s18 = smov [#allocation10]  }
 0x500   :  { %s4164_s19 = sshll.u32 %s5741_s18, 4  ;;  %s4165_s19 = int_to_ptr.vmem [resolvable:$true] %s4164_s19 }
 0x501   :  { %s5697_s6 = scalar_lea.vmem %s4165_s19, 896  ;;  %p5702_p13 = scmp.lt.s32.totalorder %s4165_s19, %s4165_s19 }
 0x502   :  { %p5698_p12 = scmp.ne.s32.totalorder %s4165_s19, %s5697_s6  ;;  %p5703_p0 = scmp.lt.s32.totalorder %s5697_s6, %s5697_s6 }
 0x504   :  { %p5704_p1 = por %p5703_p0, %p5702_p13 }
 0x506   :  { %p5705_p2 = pnand %p5704_p1, %p5698_p12 }
 0x513   :  { %v4768_v41 = vpop.f32.mrb[20].mxu1 }
 0x514   :  { %v4769_v19 = vpop.f32.mrb[21].mxu1 }
 0x515   :  { %v4770_v20 = vadd.f32 %v4769_v19, %v4768_v41  ;;  %v4771_v21 = vpop.f32.mrb[22].mxu1 }
 0x516   :  { %v4772_v22 = vpop.f32.mrb[23].mxu1 }
 0x533   :  { %v4790_v24 = vpop.f32.mrb[24].mxu1 }
 0x534   :  { %v4791_v25 = vpop.f32.mrb[25].mxu1 }
 0x535   :  { %v4792_v26 = vadd.f32 %v4791_v25, %v4790_v24  ;;  %v4793_v27 = vpop.f32.mrb[26].mxu1 }
 0x536   :  { %v4794_v28 = vpop.f32.mrb[27].mxu1 }
 0x537   :  { %v4139_v16 = vadd.f32 %v4792_v26, %v4770_v20 }
 0x539   :  { %v4150_v29 = vmax.f32 %v4139_v16, 0.0 }
 0x53b   :  { %4157 = vst [vmem:[#allocation10 + $0x30] sm:$0xff] %v4150_v29 }
 0x572   :  { %v4057_v30 = vpop.f32.mrb[16].mxu0 }
 0x573   :  { %v4148_v31 = vmax.f32 %v4057_v30, 0.0  ;;  %v4059_v33 = vpop.f32.mrb[17].mxu0 }
 0x574   :  { %v4149_v34 = vmax.f32 %v4059_v33, 0.0  ;;  %v4061_v36 = vpop.f32.mrb[18].mxu0 }
 0x575   :  { %4155 = vst [vmem:[#allocation10 + $0x20] sm:$0xff] %v4148_v31  ;;  %v4062_v37 = vpop.f32.mrb[19].mxu0 }
 0x576   :  { %4156 = vst [vmem:[#allocation10 + $0x28] sm:$0xff] %v4149_v34 }
 0x577   :  { %5708 = shalt.err (!%p5705_p2)
}
 0x578   :  { %s5709_s2 = scalar_lea.hbm %s5931_s5, 896 }
 0x579   :  { %p5710_p3 = scmp.ne.s32.totalorder %s5931_s5, %s5709_s2  ;;  %p5713_p4 = scmp.lt.u32.totalorder %s5709_s2, %s5931_s5 }
 0x57b   :  { %p5715_p5 = pnand %p5713_p4, %p5710_p3 }
 0x57d   :  { %5718 = shalt.err (!%p5715_p5)
}
 0x57e   :  { %4167 = dma.vmem_to_hbm [thread:$0]  %s4165_s19, 896, %s5931_s5, [#allocation4]  }
 0x57f   :  { %5725 = dma.done.wait [#allocation4], 896  }
 0x580   :  { %5726 = vsyncadd [#allocation4], 4294966400 }
 0x581   :  { %5727 = dma.done.wait [#allocation12], 128  }
 0x582   :  { %5728 = vsyncadd [#allocation12], 4294967168 }
 0x583   :  { %4184 = vsyncpa [#allocation3], 1 }
 0x584   :  { %4185 = vsyncpa [#allocation6], 1 }
 0x585   :  { %4186 = vsyncpa [#allocation9], 1 }
 0x586   :  { %4187 = vsyncpa [#allocation4], 1 }
 0x587   :  { %4188 = vsyncpa [#allocation12], 1 }

</bundles_post_ra>
